<compile_context>
chip_gen: v7x
topology: tpu7x:2x2x1
jax: 0.10.0
libtpu: 0.0.40
codegen_flags: <defaults>
</compile_context>

<pallas_src>
import functools

import jax
import jax.numpy as jnp
import numpy as np
from jax.experimental import pallas as pl
from jax.experimental.pallas import tpu as pltpu


# ----------------------------------------------------------------------------
# Fused kernel factory: whole model (all layers, both directions fused per step,
# linear head) runs in a single no-grid pallas_call, every operand in VMEM.
# Gate order matches PyTorch: [i, f, g, o] within each direction's 4H block.
# ----------------------------------------------------------------------------
def _make_fused_lstm_kernel(T, B, BP, H, n_layers):
    """Ref layout (inputs, then output):
         x_ref (T*BP, D0)                     time-major rows, row index = t*BP + b
         per layer l:
           w_ih (D_l, 8H) = [W_ih_f | W_ih_b]
           w_hh (2H, 8H)  = block-diag(W_hh_f, W_hh_b)
           b    (1, 8H)   = [b_ih_f+b_hh_f | b_ih_b+b_hh_b]
         lin_w (1, 2*n_layers*H), lin_b (1, 1)
         out_ref (B, 1)
    """
    H4, H8 = 4 * H, 8 * H

    def kernel(*refs):
        x_ref = refs[0]
        layer_refs = refs[1:1 + 3 * n_layers]
        lin_w_ref = refs[1 + 3 * n_layers]
        lin_b_ref = refs[2 + 3 * n_layers]
        out_ref = refs[3 + 3 * n_layers]

        h_finals = []                 # order: l0_fwd, l0_bwd, l1_fwd, l1_bwd, ... (PyTorch h_n)
        x_in = x_ref[...]             # (T*BP, D0)
        for l in range(n_layers):
            w_ih_ref, w_hh_ref, b_ref = layer_refs[3 * l:3 * l + 3]

            # Fused, hoisted input projection for BOTH directions (+ folded biases):
            # one (T*BP, D) x (D, 8H) matmul per layer.  Columns [0:4H] = fwd gates,
            # [4H:8H] = bwd gates, each in PyTorch order [i, f, g, o].
            gx = (jnp.dot(x_in, w_ih_ref[...], preferred_element_type=jnp.float32)
                  + b_ref[...])                                        # (T*BP, 8H)
            w_hh = w_hh_ref[...]                                       # (2H, 8H) block-diag

            h_f = jnp.zeros((BP, H), jnp.float32)
            h_b = jnp.zeros((BP, H), jnp.float32)
            c_f = jnp.zeros((BP, H), jnp.float32)
            c_b = jnp.zeros((BP, H), jnp.float32)
            h_seq_f = [None] * T
            h_seq_b = [None] * T

            # Fully unrolled serial recurrence: ONE MXU matmul per step covers both
            # directions (fwd consumes time s, bwd consumes time T-1-s).
            # TODO(synk): switch to lax.fori_loop + VMEM-resident sequence (and a
            # vmem_limit_bytes guardrail / time-chunked grid) if T/B/H ever grow beyond
            # toy sizes — v7x's 64 MiB VMEM is the first to run out.
            for s in range(T):
                t_f = s
                t_b = T - 1 - s
                # Sublane-aligned row slices (BP is a multiple of 8); each 4H half is
                # exactly one 128-lane tile, so this concat is shuffle-free.
                gate_in = jnp.concatenate(
                    [gx[t_f * BP:(t_f + 1) * BP, :H4],
                     gx[t_b * BP:(t_b + 1) * BP, H4:]], axis=-1)       # (BP, 8H)
                h_fb = jnp.concatenate([h_f, h_b], axis=-1)            # (BP, 2H)
                gates = gate_in + jnp.dot(h_fb, w_hh,
                                          preferred_element_type=jnp.float32)  # (BP, 8H)
                sg = jax.nn.sigmoid(gates)   # dense EUP work over the full 8H width
                tg = jnp.tanh(gates)
                # fwd gates
                i_f = sg[:, 0 * H:1 * H]
                f_f = sg[:, 1 * H:2 * H]
                n_f = tg[:, 2 * H:3 * H]
                o_f = sg[:, 3 * H:4 * H]
                # bwd gates
                i_b = sg[:, H4 + 0 * H:H4 + 1 * H]
                f_b = sg[:, H4 + 1 * H:H4 + 2 * H]
                n_b = tg[:, H4 + 2 * H:H4 + 3 * H]
                o_b = sg[:, H4 + 3 * H:H4 + 4 * H]
                c_f = f_f * c_f + i_f * n_f
                c_b = f_b * c_b + i_b * n_b
                h_f = o_f * jnp.tanh(c_f)
                h_b = o_b * jnp.tanh(c_b)
                h_seq_f[t_f] = h_f
                h_seq_b[t_b] = h_b

            h_finals.extend([h_f, h_b])
            if l + 1 < n_layers:
                # Next-layer input, assembled from live registers (no VMEM scratch,
                # no masked sub-tile stores): (T*BP, 2H), fwd features then bwd.
                # TODO(synk): inter-layer dropout omitted (eval-mode forward semantics).
                x_in = jnp.concatenate(
                    [jnp.concatenate([h_seq_f[t], h_seq_b[t]], axis=-1)
                     for t in range(T)], axis=0)

        # Final Linear(2*n_layers*H -> 1): one lane-dense (BP, 128) multiply + a single
        # cross-lane reduce (a 1-column MXU matmul would waste 255/256 of the MXU).
        hcat = jnp.concatenate(h_finals, axis=-1)                      # (BP, 2*n_layers*H)
        out = jnp.sum(hcat * lin_w_ref[...], axis=-1, keepdims=True) + lin_b_ref[...]
        out_ref[...] = out[:B, :].astype(out_ref.dtype)

    return kernel


# ----------------------------------------------------------------------------
# Host-side weight packing for the fused kernel.
# ----------------------------------------------------------------------------
def _pack_direction_pair(fwd, bwd, H):
    """W_ih: (D, 8H) = [W_ih_f | W_ih_b]; W_hh: (2H, 8H) block-diag; b: (1, 8H)."""
    w_ih_f, w_hh_f, b_f = fwd
    w_ih_b, w_hh_b, b_b = bwd
    zeros = jnp.zeros((H, 4 * H), jnp.float32)
    w_ih = jnp.concatenate([w_ih_f, w_ih_b], axis=1)
    w_hh = jnp.concatenate(
        [jnp.concatenate([w_hh_f, zeros], axis=1),
         jnp.concatenate([zeros, w_hh_b], axis=1)], axis=0)
    b = jnp.concatenate([b_f, b_b], axis=1)
    return w_ih, w_hh, b


# ----------------------------------------------------------------------------
# Model forward / predict
# ----------------------------------------------------------------------------
@functools.partial(jax.jit, static_argnames=("n_layers", "hidden_dim"))
def lstm_model_forward(text, params, n_layers, hidden_dim):
    """text: (B, T, E) -> (B, 1); eval-mode forward of the PyTorch module."""
    B, T, E = text.shape
    H = hidden_dim
    BP = ((B + 7) // 8) * 8   # pad batch to a sublane multiple -> all in-kernel slices aligned

    # Time-major, batch-padded 2-D slab: row index = t*BP + b.  The per-layer fused
    # input projection is then ONE (T*BP, D) matmul and every per-step slice is aligned.
    x = jnp.transpose(text.astype(jnp.float32), (1, 0, 2))             # (T, B, E)
    x = jnp.pad(x, ((0, 0), (0, BP - B), (0, 0)))                      # (T, BP, E)
    x2d = x.reshape(T * BP, E)

    args = [x2d]
    for l in range(n_layers):
        args.extend(_pack_direction_pair(params[f"l{l}_fwd"], params[f"l{l}_bwd"], H))
    lin_w, lin_b = params["linear"]
    args.extend([lin_w, lin_b])

    kernel = _make_fused_lstm_kernel(T, B, BP, H, n_layers)
    vmem_spec = pl.BlockSpec(memory_space=pltpu.MemorySpace.VMEM)
    return pl.pallas_call(
        kernel,
        # No grid: single kernel invocation, everything resident in VMEM (footprint
        # << 1 MiB at these shapes).
        # TODO(synk): for large serving batches, add a batch-tile grid axis marked
        # "parallel" (dimension_semantics) so v7x's second TensorCore processes
        # independent batch halves.
        out_shape=jax.ShapeDtypeStruct((B, 1), jnp.float32),
        in_specs=[vmem_spec] * len(args),
        out_specs=vmem_spec,
    )(*args)


def lstm_model_predict(text, params, n_layers, hidden_dim):
    out = lstm_model_forward(text, params, n_layers, hidden_dim)
    return jnp.round(jax.nn.sigmoid(out))


# ----------------------------------------------------------------------------
# Parameter construction (deterministic, PyTorch-style uniform(-1/sqrt(H), 1/sqrt(H)))
# ----------------------------------------------------------------------------
def init_lstm_params(key, embedding_dim, hidden_dim, n_layers):
    H = hidden_dim
    k = 1.0 / jnp.sqrt(jnp.float32(H))
    params = {}
    for l in range(n_layers):
        d_in = embedding_dim if l == 0 else 2 * hidden_dim
        for direction in ("fwd", "bwd"):
            key, k1, k2, k3, k4 = jax.random.split(key, 5)
            w_ih = jax.random.uniform(k1, (4 * H, d_in), jnp.float32, -k, k)
            w_hh = jax.random.uniform(k2, (4 * H, H), jnp.float32, -k, k)
            b_ih = jax.random.uniform(k3, (4 * H,), jnp.float32, -k, k)
            b_hh = jax.random.uniform(k4, (4 * H,), jnp.float32, -k, k)
            params[f"l{l}_{direction}"] = (
                w_ih.T,                             # (d_in, 4H), gate order [i,f,g,o]
                w_hh.T,                             # (H, 4H)
                (b_ih + b_hh).reshape(1, 4 * H),    # (1, 4H) folded bias
            )
    in_f = 2 * n_layers * H
    kl = 1.0 / jnp.sqrt(jnp.float32(in_f))
    key, k1, k2 = jax.random.split(key, 3)
    lin_w = jax.random.uniform(k1, (1, in_f), jnp.float32, -kl, kl)
    lin_b = jax.random.uniform(k2, (1,), jnp.float32, -kl, kl)
    params["linear"] = (lin_w, lin_b.reshape(1, 1))   # (1, in_f), (1, 1)
    return params


# ----------------------------------------------------------------------------
# Pure-JAX reference (PyTorch eval-mode semantics) for a correctness self-check.
# ----------------------------------------------------------------------------
def _lstm_ref_forward(text, params, n_layers, hidden_dim):
    H = hidden_dim
    x = jnp.transpose(text.astype(jnp.float32), (1, 0, 2))   # (T, B, E)
    _, B, _ = x.shape
    layer_in = x
    h_finals = []
    for l in range(n_layers):
        seqs = []
        for direction, rev in (("fwd", False), ("bwd", True)):
            w_ih, w_hh, b = params[f"l{l}_{direction}"]
            inp = layer_in[::-1] if rev else layer_in

            def step(carry, x_t, w_ih=w_ih, w_hh=w_hh, b=b):
                h, c = carry
                g = x_t @ w_ih + h @ w_hh + b
                i = jax.nn.sigmoid(g[:, 0 * H:1 * H])
                f = jax.nn.sigmoid(g[:, 1 * H:2 * H])
                gg = jnp.tanh(g[:, 2 * H:3 * H])
                o = jax.nn.sigmoid(g[:, 3 * H:4 * H])
                c = f * c + i * gg
                h = o * jnp.tanh(c)
                return (h, c), h

            init = (jnp.zeros((B, H), jnp.float32), jnp.zeros((B, H), jnp.float32))
            (h_last, _), hs = jax.lax.scan(step, init, inp)
            seqs.append(hs[::-1] if rev else hs)
            h_finals.append(h_last)
        layer_in = jnp.concatenate(seqs, axis=-1)
    concat_hn = jnp.concatenate(h_finals, axis=-1)
    lin_w, lin_b = params["linear"]
    return concat_hn @ lin_w.T + lin_b


if __name__ == "__main__":
    # Small shapes consistent with the module's forward.
    B, T, E, H, NL = 2, 8, 16, 32, 2
    key = jax.random.PRNGKey(0)
    key, pkey, xkey = jax.random.split(key, 3)

    params = init_lstm_params(pkey, embedding_dim=E, hidden_dim=H, n_layers=NL)
    text = jax.random.normal(xkey, (B, T, E), dtype=jnp.float32)

    out = jax.block_until_ready(lstm_model_forward(text, params, n_layers=NL, hidden_dim=H))
    assert out.shape == (B, 1) and out.dtype == jnp.float32

    ref = jax.block_until_ready(_lstm_ref_forward(text, params, NL, H))
    np.testing.assert_allclose(np.asarray(out), np.asarray(ref), rtol=1e-2, atol=1e-2)

    pred = jax.block_until_ready(lstm_model_predict(text, params, NL, H))
    assert pred.shape == (B, 1)

    print("KERNEL_OK")
</pallas_src>

<mosaic_0001>
module attributes {stable_mosaic.version = 11 : i64} {
  func.func @kernel(%arg0: memref<64x16xf32, #tpu.memory_space<vmem>>, %arg1: memref<16x256xf32, #tpu.memory_space<vmem>>, %arg2: memref<64x256xf32, #tpu.memory_space<vmem>>, %arg3: memref<1x256xf32, #tpu.memory_space<vmem>>, %arg4: memref<64x256xf32, #tpu.memory_space<vmem>>, %arg5: memref<64x256xf32, #tpu.memory_space<vmem>>, %arg6: memref<1x256xf32, #tpu.memory_space<vmem>>, %arg7: memref<1x128xf32, #tpu.memory_space<vmem>>, %arg8: memref<1x1xf32, #tpu.memory_space<vmem>>, %arg9: memref<2x1xf32, #tpu.memory_space<vmem>>) attributes {dimension_semantics = [], scalar_prefetch = 0 : i64, scratch_operands = 0 : i64, tpu.core_type = #tpu.core_type<tc>} {
    %c0 = arith.constant 0 : index
    %c0_0 = arith.constant 0 : index
    %0 = vector.load %arg0[%c0, %c0_0] : memref<64x16xf32, #tpu.memory_space<vmem>>, vector<64x16xf32>
    %c0_1 = arith.constant 0 : index
    %c0_2 = arith.constant 0 : index
    %1 = vector.load %arg1[%c0_1, %c0_2] : memref<16x256xf32, #tpu.memory_space<vmem>>, vector<16x256xf32>
    %cst = arith.constant dense<0.000000e+00> : vector<64x256xf32>
    %2 = tpu.matmul %0, %1, %cst {dimension_numbers = #tpu.dot_dimension_numbers<[1], [0], [0], [1], [0, 0, 1, 1], [], []>} : vector<64x16xf32>, vector<16x256xf32>, vector<64x256xf32> -> vector<64x256xf32>
    %c0_3 = arith.constant 0 : index
    %c0_4 = arith.constant 0 : index
    %3 = vector.load %arg3[%c0_3, %c0_4] : memref<1x256xf32, #tpu.memory_space<vmem>>, vector<1x256xf32>
    %4 = vector.broadcast %3 : vector<1x256xf32> to vector<64x256xf32>
    %5 = arith.addf %2, %4 : vector<64x256xf32>
    %c0_5 = arith.constant 0 : index
    %c0_6 = arith.constant 0 : index
    %6 = vector.load %arg2[%c0_5, %c0_6] : memref<64x256xf32, #tpu.memory_space<vmem>>, vector<64x256xf32>
    %cst_7 = arith.constant 0.000000e+00 : f32
    %7 = vector.broadcast %cst_7 : f32 to vector<8x32xf32>
    %cst_8 = arith.constant 0.000000e+00 : f32
    %8 = vector.broadcast %cst_8 : f32 to vector<8x32xf32>
    %cst_9 = arith.constant 0.000000e+00 : f32
    %9 = vector.broadcast %cst_9 : f32 to vector<8x32xf32>
    %cst_10 = arith.constant 0.000000e+00 : f32
    %10 = vector.broadcast %cst_10 : f32 to vector<8x32xf32>
    %11 = vector.extract_strided_slice %5 {offsets = [0, 0], sizes = [8, 128], strides = [1, 1]} : vector<64x256xf32> to vector<8x128xf32>
    %12 = vector.extract_strided_slice %5 {offsets = [56, 128], sizes = [8, 128], strides = [1, 1]} : vector<64x256xf32> to vector<8x128xf32>
    %13 = tpu.concatenate %11, %12 in 1 : vector<8x128xf32>, vector<8x128xf32> -> vector<8x256xf32>
    %14 = tpu.concatenate %7, %8 in 1 : vector<8x32xf32>, vector<8x32xf32> -> vector<8x64xf32>
    %cst_11 = arith.constant dense<0.000000e+00> : vector<8x256xf32>
    %15 = tpu.matmul %14, %6, %cst_11 {dimension_numbers = #tpu.dot_dimension_numbers<[1], [0], [0], [1], [0, 0, 1, 1], [], []>} : vector<8x64xf32>, vector<64x256xf32>, vector<8x256xf32> -> vector<8x256xf32>
    %16 = arith.addf %13, %15 : vector<8x256xf32>
    %17 = arith.negf %16 : vector<8x256xf32>
    %18 = math.exp %17 : vector<8x256xf32>
    %cst_12 = arith.constant 1.000000e+00 : f32
    %19 = vector.broadcast %cst_12 : f32 to vector<8x256xf32>
    %20 = arith.addf %19, %18 : vector<8x256xf32>
    %21 = arith.divf %19, %20 : vector<8x256xf32>
    %22 = math.tanh %16 : vector<8x256xf32>
    %23 = vector.extract_strided_slice %21 {offsets = [0, 0], sizes = [8, 32], strides = [1, 1]} : vector<8x256xf32> to vector<8x32xf32>
    %24 = vector.extract_strided_slice %21 {offsets = [0, 32], sizes = [8, 32], strides = [1, 1]} : vector<8x256xf32> to vector<8x32xf32>
    %25 = vector.extract_strided_slice %22 {offsets = [0, 64], sizes = [8, 32], strides = [1, 1]} : vector<8x256xf32> to vector<8x32xf32>
    %26 = vector.extract_strided_slice %21 {offsets = [0, 96], sizes = [8, 32], strides = [1, 1]} : vector<8x256xf32> to vector<8x32xf32>
    %27 = vector.extract_strided_slice %21 {offsets = [0, 128], sizes = [8, 32], strides = [1, 1]} : vector<8x256xf32> to vector<8x32xf32>
    %28 = vector.extract_strided_slice %21 {offsets = [0, 160], sizes = [8, 32], strides = [1, 1]} : vector<8x256xf32> to vector<8x32xf32>
    %29 = vector.extract_strided_slice %22 {offsets = [0, 192], sizes = [8, 32], strides = [1, 1]} : vector<8x256xf32> to vector<8x32xf32>
    %30 = vector.extract_strided_slice %21 {offsets = [0, 224], sizes = [8, 32], strides = [1, 1]} : vector<8x256xf32> to vector<8x32xf32>
    %31 = arith.mulf %24, %9 : vector<8x32xf32>
    %32 = arith.mulf %23, %25 : vector<8x32xf32>
    %33 = arith.addf %31, %32 : vector<8x32xf32>
    %34 = arith.mulf %28, %10 : vector<8x32xf32>
    %35 = arith.mulf %27, %29 : vector<8x32xf32>
    %36 = arith.addf %34, %35 : vector<8x32xf32>
    %37 = math.tanh %33 : vector<8x32xf32>
    %38 = arith.mulf %26, %37 : vector<8x32xf32>
    %39 = math.tanh %36 : vector<8x32xf32>
    %40 = arith.mulf %30, %39 : vector<8x32xf32>
    %41 = vector.extract_strided_slice %5 {offsets = [8, 0], sizes = [8, 128], strides = [1, 1]} : vector<64x256xf32> to vector<8x128xf32>
    %42 = vector.extract_strided_slice %5 {offsets = [48, 128], sizes = [8, 128], strides = [1, 1]} : vector<64x256xf32> to vector<8x128xf32>
    %43 = tpu.concatenate %41, %42 in 1 : vector<8x128xf32>, vector<8x128xf32> -> vector<8x256xf32>
    %44 = tpu.concatenate %38, %40 in 1 : vector<8x32xf32>, vector<8x32xf32> -> vector<8x64xf32>
    %cst_13 = arith.constant dense<0.000000e+00> : vector<8x256xf32>
    %45 = tpu.matmul %44, %6, %cst_13 {dimension_numbers = #tpu.dot_dimension_numbers<[1], [0], [0], [1], [0, 0, 1, 1], [], []>} : vector<8x64xf32>, vector<64x256xf32>, vector<8x256xf32> -> vector<8x256xf32>
    %46 = arith.addf %43, %45 : vector<8x256xf32>
    %47 = arith.negf %46 : vector<8x256xf32>
    %48 = math.exp %47 : vector<8x256xf32>
    %cst_14 = arith.constant 1.000000e+00 : f32
    %49 = vector.broadcast %cst_14 : f32 to vector<8x256xf32>
    %50 = arith.addf %49, %48 : vector<8x256xf32>
    %51 = arith.divf %49, %50 : vector<8x256xf32>
    %52 = math.tanh %46 : vector<8x256xf32>
    %53 = vector.extract_strided_slice %51 {offsets = [0, 0], sizes = [8, 32], strides = [1, 1]} : vector<8x256xf32> to vector<8x32xf32>
    %54 = vector.extract_strided_slice %51 {offsets = [0, 32], sizes = [8, 32], strides = [1, 1]} : vector<8x256xf32> to vector<8x32xf32>
    %55 = vector.extract_strided_slice %52 {offsets = [0, 64], sizes = [8, 32], strides = [1, 1]} : vector<8x256xf32> to vector<8x32xf32>
    %56 = vector.extract_strided_slice %51 {offsets = [0, 96], sizes = [8, 32], strides = [1, 1]} : vector<8x256xf32> to vector<8x32xf32>
    %57 = vector.extract_strided_slice %51 {offsets = [0, 128], sizes = [8, 32], strides = [1, 1]} : vector<8x256xf32> to vector<8x32xf32>
    %58 = vector.extract_strided_slice %51 {offsets = [0, 160], sizes = [8, 32], strides = [1, 1]} : vector<8x256xf32> to vector<8x32xf32>
    %59 = vector.extract_strided_slice %52 {offsets = [0, 192], sizes = [8, 32], strides = [1, 1]} : vector<8x256xf32> to vector<8x32xf32>
    %60 = vector.extract_strided_slice %51 {offsets = [0, 224], sizes = [8, 32], strides = [1, 1]} : vector<8x256xf32> to vector<8x32xf32>
    %61 = arith.mulf %54, %33 : vector<8x32xf32>
    %62 = arith.mulf %53, %55 : vector<8x32xf32>
    %63 = arith.addf %61, %62 : vector<8x32xf32>
    %64 = arith.mulf %58, %36 : vector<8x32xf32>
    %65 = arith.mulf %57, %59 : vector<8x32xf32>
    %66 = arith.addf %64, %65 : vector<8x32xf32>
    %67 = math.tanh %63 : vector<8x32xf32>
    %68 = arith.mulf %56, %67 : vector<8x32xf32>
    %69 = math.tanh %66 : vector<8x32xf32>
    %70 = arith.mulf %60, %69 : vector<8x32xf32>
    %71 = vector.extract_strided_slice %5 {offsets = [16, 0], sizes = [8, 128], strides = [1, 1]} : vector<64x256xf32> to vector<8x128xf32>
    %72 = vector.extract_strided_slice %5 {offsets = [40, 128], sizes = [8, 128], strides = [1, 1]} : vector<64x256xf32> to vector<8x128xf32>
    %73 = tpu.concatenate %71, %72 in 1 : vector<8x128xf32>, vector<8x128xf32> -> vector<8x256xf32>
    %74 = tpu.concatenate %68, %70 in 1 : vector<8x32xf32>, vector<8x32xf32> -> vector<8x64xf32>
    %cst_15 = arith.constant dense<0.000000e+00> : vector<8x256xf32>
    %75 = tpu.matmul %74, %6, %cst_15 {dimension_numbers = #tpu.dot_dimension_numbers<[1], [0], [0], [1], [0, 0, 1, 1], [], []>} : vector<8x64xf32>, vector<64x256xf32>, vector<8x256xf32> -> vector<8x256xf32>
    %76 = arith.addf %73, %75 : vector<8x256xf32>
    %77 = arith.negf %76 : vector<8x256xf32>
    %78 = math.exp %77 : vector<8x256xf32>
    %cst_16 = arith.constant 1.000000e+00 : f32
    %79 = vector.broadcast %cst_16 : f32 to vector<8x256xf32>
    %80 = arith.addf %79, %78 : vector<8x256xf32>
    %81 = arith.divf %79, %80 : vector<8x256xf32>
    %82 = math.tanh %76 : vector<8x256xf32>
    %83 = vector.extract_strided_slice %81 {offsets = [0, 0], sizes = [8, 32], strides = [1, 1]} : vector<8x256xf32> to vector<8x32xf32>
    %84 = vector.extract_strided_slice %81 {offsets = [0, 32], sizes = [8, 32], strides = [1, 1]} : vector<8x256xf32> to vector<8x32xf32>
    %85 = vector.extract_strided_slice %82 {offsets = [0, 64], sizes = [8, 32], strides = [1, 1]} : vector<8x256xf32> to vector<8x32xf32>
    %86 = vector.extract_strided_slice %81 {offsets = [0, 96], sizes = [8, 32], strides = [1, 1]} : vector<8x256xf32> to vector<8x32xf32>
    %87 = vector.extract_strided_slice %81 {offsets = [0, 128], sizes = [8, 32], strides = [1, 1]} : vector<8x256xf32> to vector<8x32xf32>
    %88 = vector.extract_strided_slice %81 {offsets = [0, 160], sizes = [8, 32], strides = [1, 1]} : vector<8x256xf32> to vector<8x32xf32>
    %89 = vector.extract_strided_slice %82 {offsets = [0, 192], sizes = [8, 32], strides = [1, 1]} : vector<8x256xf32> to vector<8x32xf32>
    %90 = vector.extract_strided_slice %81 {offsets = [0, 224], sizes = [8, 32], strides = [1, 1]} : vector<8x256xf32> to vector<8x32xf32>
    %91 = arith.mulf %84, %63 : vector<8x32xf32>
    %92 = arith.mulf %83, %85 : vector<8x32xf32>
    %93 = arith.addf %91, %92 : vector<8x32xf32>
    %94 = arith.mulf %88, %66 : vector<8x32xf32>
    %95 = arith.mulf %87, %89 : vector<8x32xf32>
    %96 = arith.addf %94, %95 : vector<8x32xf32>
    %97 = math.tanh %93 : vector<8x32xf32>
    %98 = arith.mulf %86, %97 : vector<8x32xf32>
    %99 = math.tanh %96 : vector<8x32xf32>
    %100 = arith.mulf %90, %99 : vector<8x32xf32>
    %101 = vector.extract_strided_slice %5 {offsets = [24, 0], sizes = [8, 128], strides = [1, 1]} : vector<64x256xf32> to vector<8x128xf32>
    %102 = vector.extract_strided_slice %5 {offsets = [32, 128], sizes = [8, 128], strides = [1, 1]} : vector<64x256xf32> to vector<8x128xf32>
    %103 = tpu.concatenate %101, %102 in 1 : vector<8x128xf32>, vector<8x128xf32> -> vector<8x256xf32>
    %104 = tpu.concatenate %98, %100 in 1 : vector<8x32xf32>, vector<8x32xf32> -> vector<8x64xf32>
    %cst_17 = arith.constant dense<0.000000e+00> : vector<8x256xf32>
    %105 = tpu.matmul %104, %6, %cst_17 {dimension_numbers = #tpu.dot_dimension_numbers<[1], [0], [0], [1], [0, 0, 1, 1], [], []>} : vector<8x64xf32>, vector<64x256xf32>, vector<8x256xf32> -> vector<8x256xf32>
    %106 = arith.addf %103, %105 : vector<8x256xf32>
    %107 = arith.negf %106 : vector<8x256xf32>
    %108 = math.exp %107 : vector<8x256xf32>
    %cst_18 = arith.constant 1.000000e+00 : f32
    %109 = vector.broadcast %cst_18 : f32 to vector<8x256xf32>
    %110 = arith.addf %109, %108 : vector<8x256xf32>
    %111 = arith.divf %109, %110 : vector<8x256xf32>
    %112 = math.tanh %106 : vector<8x256xf32>
    %113 = vector.extract_strided_slice %111 {offsets = [0, 0], sizes = [8, 32], strides = [1, 1]} : vector<8x256xf32> to vector<8x32xf32>
    %114 = vector.extract_strided_slice %111 {offsets = [0, 32], sizes = [8, 32], strides = [1, 1]} : vector<8x256xf32> to vector<8x32xf32>
    %115 = vector.extract_strided_slice %112 {offsets = [0, 64], sizes = [8, 32], strides = [1, 1]} : vector<8x256xf32> to vector<8x32xf32>
    %116 = vector.extract_strided_slice %111 {offsets = [0, 96], sizes = [8, 32], strides = [1, 1]} : vector<8x256xf32> to vector<8x32xf32>
    %117 = vector.extract_strided_slice %111 {offsets = [0, 128], sizes = [8, 32], strides = [1, 1]} : vector<8x256xf32> to vector<8x32xf32>
    %118 = vector.extract_strided_slice %111 {offsets = [0, 160], sizes = [8, 32], strides = [1, 1]} : vector<8x256xf32> to vector<8x32xf32>
    %119 = vector.extract_strided_slice %112 {offsets = [0, 192], sizes = [8, 32], strides = [1, 1]} : vector<8x256xf32> to vector<8x32xf32>
    %120 = vector.extract_strided_slice %111 {offsets = [0, 224], sizes = [8, 32], strides = [1, 1]} : vector<8x256xf32> to vector<8x32xf32>
    %121 = arith.mulf %114, %93 : vector<8x32xf32>
    %122 = arith.mulf %113, %115 : vector<8x32xf32>
    %123 = arith.addf %121, %122 : vector<8x32xf32>
    %124 = arith.mulf %118, %96 : vector<8x32xf32>
    %125 = arith.mulf %117, %119 : vector<8x32xf32>
    %126 = arith.addf %124, %125 : vector<8x32xf32>
    %127 = math.tanh %123 : vector<8x32xf32>
    %128 = arith.mulf %116, %127 : vector<8x32xf32>
    %129 = math.tanh %126 : vector<8x32xf32>
    %130 = arith.mulf %120, %129 : vector<8x32xf32>
    %131 = vector.extract_strided_slice %5 {offsets = [32, 0], sizes = [8, 128], strides = [1, 1]} : vector<64x256xf32> to vector<8x128xf32>
    %132 = vector.extract_strided_slice %5 {offsets = [24, 128], sizes = [8, 128], strides = [1, 1]} : vector<64x256xf32> to vector<8x128xf32>
    %133 = tpu.concatenate %131, %132 in 1 : vector<8x128xf32>, vector<8x128xf32> -> vector<8x256xf32>
    %134 = tpu.concatenate %128, %130 in 1 : vector<8x32xf32>, vector<8x32xf32> -> vector<8x64xf32>
    %cst_19 = arith.constant dense<0.000000e+00> : vector<8x256xf32>
    %135 = tpu.matmul %134, %6, %cst_19 {dimension_numbers = #tpu.dot_dimension_numbers<[1], [0], [0], [1], [0, 0, 1, 1], [], []>} : vector<8x64xf32>, vector<64x256xf32>, vector<8x256xf32> -> vector<8x256xf32>
    %136 = arith.addf %133, %135 : vector<8x256xf32>
    %137 = arith.negf %136 : vector<8x256xf32>
    %138 = math.exp %137 : vector<8x256xf32>
    %cst_20 = arith.constant 1.000000e+00 : f32
    %139 = vector.broadcast %cst_20 : f32 to vector<8x256xf32>
    %140 = arith.addf %139, %138 : vector<8x256xf32>
    %141 = arith.divf %139, %140 : vector<8x256xf32>
    %142 = math.tanh %136 : vector<8x256xf32>
    %143 = vector.extract_strided_slice %141 {offsets = [0, 0], sizes = [8, 32], strides = [1, 1]} : vector<8x256xf32> to vector<8x32xf32>
    %144 = vector.extract_strided_slice %141 {offsets = [0, 32], sizes = [8, 32], strides = [1, 1]} : vector<8x256xf32> to vector<8x32xf32>
    %145 = vector.extract_strided_slice %142 {offsets = [0, 64], sizes = [8, 32], strides = [1, 1]} : vector<8x256xf32> to vector<8x32xf32>
    %146 = vector.extract_strided_slice %141 {offsets = [0, 96], sizes = [8, 32], strides = [1, 1]} : vector<8x256xf32> to vector<8x32xf32>
    %147 = vector.extract_strided_slice %141 {offsets = [0, 128], sizes = [8, 32], strides = [1, 1]} : vector<8x256xf32> to vector<8x32xf32>
    %148 = vector.extract_strided_slice %141 {offsets = [0, 160], sizes = [8, 32], strides = [1, 1]} : vector<8x256xf32> to vector<8x32xf32>
    %149 = vector.extract_strided_slice %142 {offsets = [0, 192], sizes = [8, 32], strides = [1, 1]} : vector<8x256xf32> to vector<8x32xf32>
    %150 = vector.extract_strided_slice %141 {offsets = [0, 224], sizes = [8, 32], strides = [1, 1]} : vector<8x256xf32> to vector<8x32xf32>
    %151 = arith.mulf %144, %123 : vector<8x32xf32>
    %152 = arith.mulf %143, %145 : vector<8x32xf32>
    %153 = arith.addf %151, %152 : vector<8x32xf32>
    %154 = arith.mulf %148, %126 : vector<8x32xf32>
    %155 = arith.mulf %147, %149 : vector<8x32xf32>
    %156 = arith.addf %154, %155 : vector<8x32xf32>
    %157 = math.tanh %153 : vector<8x32xf32>
    %158 = arith.mulf %146, %157 : vector<8x32xf32>
    %159 = math.tanh %156 : vector<8x32xf32>
    %160 = arith.mulf %150, %159 : vector<8x32xf32>
    %161 = vector.extract_strided_slice %5 {offsets = [40, 0], sizes = [8, 128], strides = [1, 1]} : vector<64x256xf32> to vector<8x128xf32>
    %162 = vector.extract_strided_slice %5 {offsets = [16, 128], sizes = [8, 128], strides = [1, 1]} : vector<64x256xf32> to vector<8x128xf32>
    %163 = tpu.concatenate %161, %162 in 1 : vector<8x128xf32>, vector<8x128xf32> -> vector<8x256xf32>
    %164 = tpu.concatenate %158, %160 in 1 : vector<8x32xf32>, vector<8x32xf32> -> vector<8x64xf32>
    %cst_21 = arith.constant dense<0.000000e+00> : vector<8x256xf32>
    %165 = tpu.matmul %164, %6, %cst_21 {dimension_numbers = #tpu.dot_dimension_numbers<[1], [0], [0], [1], [0, 0, 1, 1], [], []>} : vector<8x64xf32>, vector<64x256xf32>, vector<8x256xf32> -> vector<8x256xf32>
    %166 = arith.addf %163, %165 : vector<8x256xf32>
    %167 = arith.negf %166 : vector<8x256xf32>
    %168 = math.exp %167 : vector<8x256xf32>
    %cst_22 = arith.constant 1.000000e+00 : f32
    %169 = vector.broadcast %cst_22 : f32 to vector<8x256xf32>
    %170 = arith.addf %169, %168 : vector<8x256xf32>
    %171 = arith.divf %169, %170 : vector<8x256xf32>
    %172 = math.tanh %166 : vector<8x256xf32>
    %173 = vector.extract_strided_slice %171 {offsets = [0, 0], sizes = [8, 32], strides = [1, 1]} : vector<8x256xf32> to vector<8x32xf32>
    %174 = vector.extract_strided_slice %171 {offsets = [0, 32], sizes = [8, 32], strides = [1, 1]} : vector<8x256xf32> to vector<8x32xf32>
    %175 = vector.extract_strided_slice %172 {offsets = [0, 64], sizes = [8, 32], strides = [1, 1]} : vector<8x256xf32> to vector<8x32xf32>
    %176 = vector.extract_strided_slice %171 {offsets = [0, 96], sizes = [8, 32], strides = [1, 1]} : vector<8x256xf32> to vector<8x32xf32>
    %177 = vector.extract_strided_slice %171 {offsets = [0, 128], sizes = [8, 32], strides = [1, 1]} : vector<8x256xf32> to vector<8x32xf32>
    %178 = vector.extract_strided_slice %171 {offsets = [0, 160], sizes = [8, 32], strides = [1, 1]} : vector<8x256xf32> to vector<8x32xf32>
    %179 = vector.extract_strided_slice %172 {offsets = [0, 192], sizes = [8, 32], strides = [1, 1]} : vector<8x256xf32> to vector<8x32xf32>
    %180 = vector.extract_strided_slice %171 {offsets = [0, 224], sizes = [8, 32], strides = [1, 1]} : vector<8x256xf32> to vector<8x32xf32>
    %181 = arith.mulf %174, %153 : vector<8x32xf32>
    %182 = arith.mulf %173, %175 : vector<8x32xf32>
    %183 = arith.addf %181, %182 : vector<8x32xf32>
    %184 = arith.mulf %178, %156 : vector<8x32xf32>
    %185 = arith.mulf %177, %179 : vector<8x32xf32>
    %186 = arith.addf %184, %185 : vector<8x32xf32>
    %187 = math.tanh %183 : vector<8x32xf32>
    %188 = arith.mulf %176, %187 : vector<8x32xf32>
    %189 = math.tanh %186 : vector<8x32xf32>
    %190 = arith.mulf %180, %189 : vector<8x32xf32>
    %191 = vector.extract_strided_slice %5 {offsets = [48, 0], sizes = [8, 128], strides = [1, 1]} : vector<64x256xf32> to vector<8x128xf32>
    %192 = vector.extract_strided_slice %5 {offsets = [8, 128], sizes = [8, 128], strides = [1, 1]} : vector<64x256xf32> to vector<8x128xf32>
    %193 = tpu.concatenate %191, %192 in 1 : vector<8x128xf32>, vector<8x128xf32> -> vector<8x256xf32>
    %194 = tpu.concatenate %188, %190 in 1 : vector<8x32xf32>, vector<8x32xf32> -> vector<8x64xf32>
    %cst_23 = arith.constant dense<0.000000e+00> : vector<8x256xf32>
    %195 = tpu.matmul %194, %6, %cst_23 {dimension_numbers = #tpu.dot_dimension_numbers<[1], [0], [0], [1], [0, 0, 1, 1], [], []>} : vector<8x64xf32>, vector<64x256xf32>, vector<8x256xf32> -> vector<8x256xf32>
    %196 = arith.addf %193, %195 : vector<8x256xf32>
    %197 = arith.negf %196 : vector<8x256xf32>
    %198 = math.exp %197 : vector<8x256xf32>
    %cst_24 = arith.constant 1.000000e+00 : f32
    %199 = vector.broadcast %cst_24 : f32 to vector<8x256xf32>
    %200 = arith.addf %199, %198 : vector<8x256xf32>
    %201 = arith.divf %199, %200 : vector<8x256xf32>
    %202 = math.tanh %196 : vector<8x256xf32>
    %203 = vector.extract_strided_slice %201 {offsets = [0, 0], sizes = [8, 32], strides = [1, 1]} : vector<8x256xf32> to vector<8x32xf32>
    %204 = vector.extract_strided_slice %201 {offsets = [0, 32], sizes = [8, 32], strides = [1, 1]} : vector<8x256xf32> to vector<8x32xf32>
    %205 = vector.extract_strided_slice %202 {offsets = [0, 64], sizes = [8, 32], strides = [1, 1]} : vector<8x256xf32> to vector<8x32xf32>
    %206 = vector.extract_strided_slice %201 {offsets = [0, 96], sizes = [8, 32], strides = [1, 1]} : vector<8x256xf32> to vector<8x32xf32>
    %207 = vector.extract_strided_slice %201 {offsets = [0, 128], sizes = [8, 32], strides = [1, 1]} : vector<8x256xf32> to vector<8x32xf32>
    %208 = vector.extract_strided_slice %201 {offsets = [0, 160], sizes = [8, 32], strides = [1, 1]} : vector<8x256xf32> to vector<8x32xf32>
    %209 = vector.extract_strided_slice %202 {offsets = [0, 192], sizes = [8, 32], strides = [1, 1]} : vector<8x256xf32> to vector<8x32xf32>
    %210 = vector.extract_strided_slice %201 {offsets = [0, 224], sizes = [8, 32], strides = [1, 1]} : vector<8x256xf32> to vector<8x32xf32>
    %211 = arith.mulf %204, %183 : vector<8x32xf32>
    %212 = arith.mulf %203, %205 : vector<8x32xf32>
    %213 = arith.addf %211, %212 : vector<8x32xf32>
    %214 = arith.mulf %208, %186 : vector<8x32xf32>
    %215 = arith.mulf %207, %209 : vector<8x32xf32>
    %216 = arith.addf %214, %215 : vector<8x32xf32>
    %217 = math.tanh %213 : vector<8x32xf32>
    %218 = arith.mulf %206, %217 : vector<8x32xf32>
    %219 = math.tanh %216 : vector<8x32xf32>
    %220 = arith.mulf %210, %219 : vector<8x32xf32>
    %221 = vector.extract_strided_slice %5 {offsets = [56, 0], sizes = [8, 128], strides = [1, 1]} : vector<64x256xf32> to vector<8x128xf32>
    %222 = vector.extract_strided_slice %5 {offsets = [0, 128], sizes = [8, 128], strides = [1, 1]} : vector<64x256xf32> to vector<8x128xf32>
    %223 = tpu.concatenate %221, %222 in 1 : vector<8x128xf32>, vector<8x128xf32> -> vector<8x256xf32>
    %224 = tpu.concatenate %218, %220 in 1 : vector<8x32xf32>, vector<8x32xf32> -> vector<8x64xf32>
    %cst_25 = arith.constant dense<0.000000e+00> : vector<8x256xf32>
    %225 = tpu.matmul %224, %6, %cst_25 {dimension_numbers = #tpu.dot_dimension_numbers<[1], [0], [0], [1], [0, 0, 1, 1], [], []>} : vector<8x64xf32>, vector<64x256xf32>, vector<8x256xf32> -> vector<8x256xf32>
    %226 = arith.addf %223, %225 : vector<8x256xf32>
    %227 = arith.negf %226 : vector<8x256xf32>
    %228 = math.exp %227 : vector<8x256xf32>
    %cst_26 = arith.constant 1.000000e+00 : f32
    %229 = vector.broadcast %cst_26 : f32 to vector<8x256xf32>
    %230 = arith.addf %229, %228 : vector<8x256xf32>
    %231 = arith.divf %229, %230 : vector<8x256xf32>
    %232 = math.tanh %226 : vector<8x256xf32>
    %233 = vector.extract_strided_slice %231 {offsets = [0, 0], sizes = [8, 32], strides = [1, 1]} : vector<8x256xf32> to vector<8x32xf32>
    %234 = vector.extract_strided_slice %231 {offsets = [0, 32], sizes = [8, 32], strides = [1, 1]} : vector<8x256xf32> to vector<8x32xf32>
    %235 = vector.extract_strided_slice %232 {offsets = [0, 64], sizes = [8, 32], strides = [1, 1]} : vector<8x256xf32> to vector<8x32xf32>
    %236 = vector.extract_strided_slice %231 {offsets = [0, 96], sizes = [8, 32], strides = [1, 1]} : vector<8x256xf32> to vector<8x32xf32>
    %237 = vector.extract_strided_slice %231 {offsets = [0, 128], sizes = [8, 32], strides = [1, 1]} : vector<8x256xf32> to vector<8x32xf32>
    %238 = vector.extract_strided_slice %231 {offsets = [0, 160], sizes = [8, 32], strides = [1, 1]} : vector<8x256xf32> to vector<8x32xf32>
    %239 = vector.extract_strided_slice %232 {offsets = [0, 192], sizes = [8, 32], strides = [1, 1]} : vector<8x256xf32> to vector<8x32xf32>
    %240 = vector.extract_strided_slice %231 {offsets = [0, 224], sizes = [8, 32], strides = [1, 1]} : vector<8x256xf32> to vector<8x32xf32>
    %241 = arith.mulf %234, %213 : vector<8x32xf32>
    %242 = arith.mulf %233, %235 : vector<8x32xf32>
    %243 = arith.addf %241, %242 : vector<8x32xf32>
    %244 = arith.mulf %238, %216 : vector<8x32xf32>
    %245 = arith.mulf %237, %239 : vector<8x32xf32>
    %246 = arith.addf %244, %245 : vector<8x32xf32>
    %247 = math.tanh %243 : vector<8x32xf32>
    %248 = arith.mulf %236, %247 : vector<8x32xf32>
    %249 = math.tanh %246 : vector<8x32xf32>
    %250 = arith.mulf %240, %249 : vector<8x32xf32>
    %251 = tpu.concatenate %38, %250 in 1 : vector<8x32xf32>, vector<8x32xf32> -> vector<8x64xf32>
    %252 = tpu.concatenate %68, %220 in 1 : vector<8x32xf32>, vector<8x32xf32> -> vector<8x64xf32>
    %253 = tpu.concatenate %98, %190 in 1 : vector<8x32xf32>, vector<8x32xf32> -> vector<8x64xf32>
    %254 = tpu.concatenate %128, %160 in 1 : vector<8x32xf32>, vector<8x32xf32> -> vector<8x64xf32>
    %255 = tpu.concatenate %158, %130 in 1 : vector<8x32xf32>, vector<8x32xf32> -> vector<8x64xf32>
    %256 = tpu.concatenate %188, %100 in 1 : vector<8x32xf32>, vector<8x32xf32> -> vector<8x64xf32>
    %257 = tpu.concatenate %218, %70 in 1 : vector<8x32xf32>, vector<8x32xf32> -> vector<8x64xf32>
    %258 = tpu.concatenate %248, %40 in 1 : vector<8x32xf32>, vector<8x32xf32> -> vector<8x64xf32>
    %259 = tpu.concatenate %251, %252, %253, %254, %255, %256, %257, %258 in 0 : vector<8x64xf32>, vector<8x64xf32>, vector<8x64xf32>, vector<8x64xf32>, vector<8x64xf32>, vector<8x64xf32>, vector<8x64xf32>, vector<8x64xf32> -> vector<64x64xf32>
    %c0_27 = arith.constant 0 : index
    %c0_28 = arith.constant 0 : index
    %260 = vector.load %arg4[%c0_27, %c0_28] : memref<64x256xf32, #tpu.memory_space<vmem>>, vector<64x256xf32>
    %cst_29 = arith.constant dense<0.000000e+00> : vector<64x256xf32>
    %261 = tpu.matmul %259, %260, %cst_29 {dimension_numbers = #tpu.dot_dimension_numbers<[1], [0], [0], [1], [0, 0, 1, 1], [], []>} : vector<64x64xf32>, vector<64x256xf32>, vector<64x256xf32> -> vector<64x256xf32>
    %c0_30 = arith.constant 0 : index
    %c0_31 = arith.constant 0 : index
    %262 = vector.load %arg6[%c0_30, %c0_31] : memref<1x256xf32, #tpu.memory_space<vmem>>, vector<1x256xf32>
    %263 = vector.broadcast %262 : vector<1x256xf32> to vector<64x256xf32>
    %264 = arith.addf %261, %263 : vector<64x256xf32>
    %c0_32 = arith.constant 0 : index
    %c0_33 = arith.constant 0 : index
    %265 = vector.load %arg5[%c0_32, %c0_33] : memref<64x256xf32, #tpu.memory_space<vmem>>, vector<64x256xf32>
    %cst_34 = arith.constant 0.000000e+00 : f32
    %266 = vector.broadcast %cst_34 : f32 to vector<8x32xf32>
    %cst_35 = arith.constant 0.000000e+00 : f32
    %267 = vector.broadcast %cst_35 : f32 to vector<8x32xf32>
    %cst_36 = arith.constant 0.000000e+00 : f32
    %268 = vector.broadcast %cst_36 : f32 to vector<8x32xf32>
    %cst_37 = arith.constant 0.000000e+00 : f32
    %269 = vector.broadcast %cst_37 : f32 to vector<8x32xf32>
    %270 = vector.extract_strided_slice %264 {offsets = [0, 0], sizes = [8, 128], strides = [1, 1]} : vector<64x256xf32> to vector<8x128xf32>
    %271 = vector.extract_strided_slice %264 {offsets = [56, 128], sizes = [8, 128], strides = [1, 1]} : vector<64x256xf32> to vector<8x128xf32>
    %272 = tpu.concatenate %270, %271 in 1 : vector<8x128xf32>, vector<8x128xf32> -> vector<8x256xf32>
    %273 = tpu.concatenate %266, %267 in 1 : vector<8x32xf32>, vector<8x32xf32> -> vector<8x64xf32>
    %cst_38 = arith.constant dense<0.000000e+00> : vector<8x256xf32>
    %274 = tpu.matmul %273, %265, %cst_38 {dimension_numbers = #tpu.dot_dimension_numbers<[1], [0], [0], [1], [0, 0, 1, 1], [], []>} : vector<8x64xf32>, vector<64x256xf32>, vector<8x256xf32> -> vector<8x256xf32>
    %275 = arith.addf %272, %274 : vector<8x256xf32>
    %276 = arith.negf %275 : vector<8x256xf32>
    %277 = math.exp %276 : vector<8x256xf32>
    %cst_39 = arith.constant 1.000000e+00 : f32
    %278 = vector.broadcast %cst_39 : f32 to vector<8x256xf32>
    %279 = arith.addf %278, %277 : vector<8x256xf32>
    %280 = arith.divf %278, %279 : vector<8x256xf32>
    %281 = math.tanh %275 : vector<8x256xf32>
    %282 = vector.extract_strided_slice %280 {offsets = [0, 0], sizes = [8, 32], strides = [1, 1]} : vector<8x256xf32> to vector<8x32xf32>
    %283 = vector.extract_strided_slice %280 {offsets = [0, 32], sizes = [8, 32], strides = [1, 1]} : vector<8x256xf32> to vector<8x32xf32>
    %284 = vector.extract_strided_slice %281 {offsets = [0, 64], sizes = [8, 32], strides = [1, 1]} : vector<8x256xf32> to vector<8x32xf32>
    %285 = vector.extract_strided_slice %280 {offsets = [0, 96], sizes = [8, 32], strides = [1, 1]} : vector<8x256xf32> to vector<8x32xf32>
    %286 = vector.extract_strided_slice %280 {offsets = [0, 128], sizes = [8, 32], strides = [1, 1]} : vector<8x256xf32> to vector<8x32xf32>
    %287 = vector.extract_strided_slice %280 {offsets = [0, 160], sizes = [8, 32], strides = [1, 1]} : vector<8x256xf32> to vector<8x32xf32>
    %288 = vector.extract_strided_slice %281 {offsets = [0, 192], sizes = [8, 32], strides = [1, 1]} : vector<8x256xf32> to vector<8x32xf32>
    %289 = vector.extract_strided_slice %280 {offsets = [0, 224], sizes = [8, 32], strides = [1, 1]} : vector<8x256xf32> to vector<8x32xf32>
    %290 = arith.mulf %283, %268 : vector<8x32xf32>
    %291 = arith.mulf %282, %284 : vector<8x32xf32>
    %292 = arith.addf %290, %291 : vector<8x32xf32>
    %293 = arith.mulf %287, %269 : vector<8x32xf32>
    %294 = arith.mulf %286, %288 : vector<8x32xf32>
    %295 = arith.addf %293, %294 : vector<8x32xf32>
    %296 = math.tanh %292 : vector<8x32xf32>
    %297 = arith.mulf %285, %296 : vector<8x32xf32>
    %298 = math.tanh %295 : vector<8x32xf32>
    %299 = arith.mulf %289, %298 : vector<8x32xf32>
    %300 = vector.extract_strided_slice %264 {offsets = [8, 0], sizes = [8, 128], strides = [1, 1]} : vector<64x256xf32> to vector<8x128xf32>
    %301 = vector.extract_strided_slice %264 {offsets = [48, 128], sizes = [8, 128], strides = [1, 1]} : vector<64x256xf32> to vector<8x128xf32>
    %302 = tpu.concatenate %300, %301 in 1 : vector<8x128xf32>, vector<8x128xf32> -> vector<8x256xf32>
    %303 = tpu.concatenate %297, %299 in 1 : vector<8x32xf32>, vector<8x32xf32> -> vector<8x64xf32>
    %cst_40 = arith.constant dense<0.000000e+00> : vector<8x256xf32>
    %304 = tpu.matmul %303, %265, %cst_40 {dimension_numbers = #tpu.dot_dimension_numbers<[1], [0], [0], [1], [0, 0, 1, 1], [], []>} : vector<8x64xf32>, vector<64x256xf32>, vector<8x256xf32> -> vector<8x256xf32>
    %305 = arith.addf %302, %304 : vector<8x256xf32>
    %306 = arith.negf %305 : vector<8x256xf32>
    %307 = math.exp %306 : vector<8x256xf32>
    %cst_41 = arith.constant 1.000000e+00 : f32
    %308 = vector.broadcast %cst_41 : f32 to vector<8x256xf32>
    %309 = arith.addf %308, %307 : vector<8x256xf32>
    %310 = arith.divf %308, %309 : vector<8x256xf32>
    %311 = math.tanh %305 : vector<8x256xf32>
    %312 = vector.extract_strided_slice %310 {offsets = [0, 0], sizes = [8, 32], strides = [1, 1]} : vector<8x256xf32> to vector<8x32xf32>
    %313 = vector.extract_strided_slice %310 {offsets = [0, 32], sizes = [8, 32], strides = [1, 1]} : vector<8x256xf32> to vector<8x32xf32>
    %314 = vector.extract_strided_slice %311 {offsets = [0, 64], sizes = [8, 32], strides = [1, 1]} : vector<8x256xf32> to vector<8x32xf32>
    %315 = vector.extract_strided_slice %310 {offsets = [0, 96], sizes = [8, 32], strides = [1, 1]} : vector<8x256xf32> to vector<8x32xf32>
    %316 = vector.extract_strided_slice %310 {offsets = [0, 128], sizes = [8, 32], strides = [1, 1]} : vector<8x256xf32> to vector<8x32xf32>
    %317 = vector.extract_strided_slice %310 {offsets = [0, 160], sizes = [8, 32], strides = [1, 1]} : vector<8x256xf32> to vector<8x32xf32>
    %318 = vector.extract_strided_slice %311 {offsets = [0, 192], sizes = [8, 32], strides = [1, 1]} : vector<8x256xf32> to vector<8x32xf32>
    %319 = vector.extract_strided_slice %310 {offsets = [0, 224], sizes = [8, 32], strides = [1, 1]} : vector<8x256xf32> to vector<8x32xf32>
    %320 = arith.mulf %313, %292 : vector<8x32xf32>
    %321 = arith.mulf %312, %314 : vector<8x32xf32>
    %322 = arith.addf %320, %321 : vector<8x32xf32>
    %323 = arith.mulf %317, %295 : vector<8x32xf32>
    %324 = arith.mulf %316, %318 : vector<8x32xf32>
    %325 = arith.addf %323, %324 : vector<8x32xf32>
    %326 = math.tanh %322 : vector<8x32xf32>
    %327 = arith.mulf %315, %326 : vector<8x32xf32>
    %328 = math.tanh %325 : vector<8x32xf32>
    %329 = arith.mulf %319, %328 : vector<8x32xf32>
    %330 = vector.extract_strided_slice %264 {offsets = [16, 0], sizes = [8, 128], strides = [1, 1]} : vector<64x256xf32> to vector<8x128xf32>
    %331 = vector.extract_strided_slice %264 {offsets = [40, 128], sizes = [8, 128], strides = [1, 1]} : vector<64x256xf32> to vector<8x128xf32>
    %332 = tpu.concatenate %330, %331 in 1 : vector<8x128xf32>, vector<8x128xf32> -> vector<8x256xf32>
    %333 = tpu.concatenate %327, %329 in 1 : vector<8x32xf32>, vector<8x32xf32> -> vector<8x64xf32>
    %cst_42 = arith.constant dense<0.000000e+00> : vector<8x256xf32>
    %334 = tpu.matmul %333, %265, %cst_42 {dimension_numbers = #tpu.dot_dimension_numbers<[1], [0], [0], [1], [0, 0, 1, 1], [], []>} : vector<8x64xf32>, vector<64x256xf32>, vector<8x256xf32> -> vector<8x256xf32>
    %335 = arith.addf %332, %334 : vector<8x256xf32>
    %336 = arith.negf %335 : vector<8x256xf32>
    %337 = math.exp %336 : vector<8x256xf32>
    %cst_43 = arith.constant 1.000000e+00 : f32
    %338 = vector.broadcast %cst_43 : f32 to vector<8x256xf32>
    %339 = arith.addf %338, %337 : vector<8x256xf32>
    %340 = arith.divf %338, %339 : vector<8x256xf32>
    %341 = math.tanh %335 : vector<8x256xf32>
    %342 = vector.extract_strided_slice %340 {offsets = [0, 0], sizes = [8, 32], strides = [1, 1]} : vector<8x256xf32> to vector<8x32xf32>
    %343 = vector.extract_strided_slice %340 {offsets = [0, 32], sizes = [8, 32], strides = [1, 1]} : vector<8x256xf32> to vector<8x32xf32>
    %344 = vector.extract_strided_slice %341 {offsets = [0, 64], sizes = [8, 32], strides = [1, 1]} : vector<8x256xf32> to vector<8x32xf32>
    %345 = vector.extract_strided_slice %340 {offsets = [0, 96], sizes = [8, 32], strides = [1, 1]} : vector<8x256xf32> to vector<8x32xf32>
    %346 = vector.extract_strided_slice %340 {offsets = [0, 128], sizes = [8, 32], strides = [1, 1]} : vector<8x256xf32> to vector<8x32xf32>
    %347 = vector.extract_strided_slice %340 {offsets = [0, 160], sizes = [8, 32], strides = [1, 1]} : vector<8x256xf32> to vector<8x32xf32>
    %348 = vector.extract_strided_slice %341 {offsets = [0, 192], sizes = [8, 32], strides = [1, 1]} : vector<8x256xf32> to vector<8x32xf32>
    %349 = vector.extract_strided_slice %340 {offsets = [0, 224], sizes = [8, 32], strides = [1, 1]} : vector<8x256xf32> to vector<8x32xf32>
    %350 = arith.mulf %343, %322 : vector<8x32xf32>
    %351 = arith.mulf %342, %344 : vector<8x32xf32>
    %352 = arith.addf %350, %351 : vector<8x32xf32>
    %353 = arith.mulf %347, %325 : vector<8x32xf32>
    %354 = arith.mulf %346, %348 : vector<8x32xf32>
    %355 = arith.addf %353, %354 : vector<8x32xf32>
    %356 = math.tanh %352 : vector<8x32xf32>
    %357 = arith.mulf %345, %356 : vector<8x32xf32>
    %358 = math.tanh %355 : vector<8x32xf32>
    %359 = arith.mulf %349, %358 : vector<8x32xf32>
    %360 = vector.extract_strided_slice %264 {offsets = [24, 0], sizes = [8, 128], strides = [1, 1]} : vector<64x256xf32> to vector<8x128xf32>
    %361 = vector.extract_strided_slice %264 {offsets = [32, 128], sizes = [8, 128], strides = [1, 1]} : vector<64x256xf32> to vector<8x128xf32>
    %362 = tpu.concatenate %360, %361 in 1 : vector<8x128xf32>, vector<8x128xf32> -> vector<8x256xf32>
    %363 = tpu.concatenate %357, %359 in 1 : vector<8x32xf32>, vector<8x32xf32> -> vector<8x64xf32>
    %cst_44 = arith.constant dense<0.000000e+00> : vector<8x256xf32>
    %364 = tpu.matmul %363, %265, %cst_44 {dimension_numbers = #tpu.dot_dimension_numbers<[1], [0], [0], [1], [0, 0, 1, 1], [], []>} : vector<8x64xf32>, vector<64x256xf32>, vector<8x256xf32> -> vector<8x256xf32>
    %365 = arith.addf %362, %364 : vector<8x256xf32>
    %366 = arith.negf %365 : vector<8x256xf32>
    %367 = math.exp %366 : vector<8x256xf32>
    %cst_45 = arith.constant 1.000000e+00 : f32
    %368 = vector.broadcast %cst_45 : f32 to vector<8x256xf32>
    %369 = arith.addf %368, %367 : vector<8x256xf32>
    %370 = arith.divf %368, %369 : vector<8x256xf32>
    %371 = math.tanh %365 : vector<8x256xf32>
    %372 = vector.extract_strided_slice %370 {offsets = [0, 0], sizes = [8, 32], strides = [1, 1]} : vector<8x256xf32> to vector<8x32xf32>
    %373 = vector.extract_strided_slice %370 {offsets = [0, 32], sizes = [8, 32], strides = [1, 1]} : vector<8x256xf32> to vector<8x32xf32>
    %374 = vector.extract_strided_slice %371 {offsets = [0, 64], sizes = [8, 32], strides = [1, 1]} : vector<8x256xf32> to vector<8x32xf32>
    %375 = vector.extract_strided_slice %370 {offsets = [0, 96], sizes = [8, 32], strides = [1, 1]} : vector<8x256xf32> to vector<8x32xf32>
    %376 = vector.extract_strided_slice %370 {offsets = [0, 128], sizes = [8, 32], strides = [1, 1]} : vector<8x256xf32> to vector<8x32xf32>
    %377 = vector.extract_strided_slice %370 {offsets = [0, 160], sizes = [8, 32], strides = [1, 1]} : vector<8x256xf32> to vector<8x32xf32>
    %378 = vector.extract_strided_slice %371 {offsets = [0, 192], sizes = [8, 32], strides = [1, 1]} : vector<8x256xf32> to vector<8x32xf32>
    %379 = vector.extract_strided_slice %370 {offsets = [0, 224], sizes = [8, 32], strides = [1, 1]} : vector<8x256xf32> to vector<8x32xf32>
    %380 = arith.mulf %373, %352 : vector<8x32xf32>
    %381 = arith.mulf %372, %374 : vector<8x32xf32>
    %382 = arith.addf %380, %381 : vector<8x32xf32>
    %383 = arith.mulf %377, %355 : vector<8x32xf32>
    %384 = arith.mulf %376, %378 : vector<8x32xf32>
    %385 = arith.addf %383, %384 : vector<8x32xf32>
    %386 = math.tanh %382 : vector<8x32xf32>
    %387 = arith.mulf %375, %386 : vector<8x32xf32>
    %388 = math.tanh %385 : vector<8x32xf32>
    %389 = arith.mulf %379, %388 : vector<8x32xf32>
    %390 = vector.extract_strided_slice %264 {offsets = [32, 0], sizes = [8, 128], strides = [1, 1]} : vector<64x256xf32> to vector<8x128xf32>
    %391 = vector.extract_strided_slice %264 {offsets = [24, 128], sizes = [8, 128], strides = [1, 1]} : vector<64x256xf32> to vector<8x128xf32>
    %392 = tpu.concatenate %390, %391 in 1 : vector<8x128xf32>, vector<8x128xf32> -> vector<8x256xf32>
    %393 = tpu.concatenate %387, %389 in 1 : vector<8x32xf32>, vector<8x32xf32> -> vector<8x64xf32>
    %cst_46 = arith.constant dense<0.000000e+00> : vector<8x256xf32>
    %394 = tpu.matmul %393, %265, %cst_46 {dimension_numbers = #tpu.dot_dimension_numbers<[1], [0], [0], [1], [0, 0, 1, 1], [], []>} : vector<8x64xf32>, vector<64x256xf32>, vector<8x256xf32> -> vector<8x256xf32>
    %395 = arith.addf %392, %394 : vector<8x256xf32>
    %396 = arith.negf %395 : vector<8x256xf32>
    %397 = math.exp %396 : vector<8x256xf32>
    %cst_47 = arith.constant 1.000000e+00 : f32
    %398 = vector.broadcast %cst_47 : f32 to vector<8x256xf32>
    %399 = arith.addf %398, %397 : vector<8x256xf32>
    %400 = arith.divf %398, %399 : vector<8x256xf32>
    %401 = math.tanh %395 : vector<8x256xf32>
    %402 = vector.extract_strided_slice %400 {offsets = [0, 0], sizes = [8, 32], strides = [1, 1]} : vector<8x256xf32> to vector<8x32xf32>
    %403 = vector.extract_strided_slice %400 {offsets = [0, 32], sizes = [8, 32], strides = [1, 1]} : vector<8x256xf32> to vector<8x32xf32>
    %404 = vector.extract_strided_slice %401 {offsets = [0, 64], sizes = [8, 32], strides = [1, 1]} : vector<8x256xf32> to vector<8x32xf32>
    %405 = vector.extract_strided_slice %400 {offsets = [0, 96], sizes = [8, 32], strides = [1, 1]} : vector<8x256xf32> to vector<8x32xf32>
    %406 = vector.extract_strided_slice %400 {offsets = [0, 128], sizes = [8, 32], strides = [1, 1]} : vector<8x256xf32> to vector<8x32xf32>
    %407 = vector.extract_strided_slice %400 {offsets = [0, 160], sizes = [8, 32], strides = [1, 1]} : vector<8x256xf32> to vector<8x32xf32>
    %408 = vector.extract_strided_slice %401 {offsets = [0, 192], sizes = [8, 32], strides = [1, 1]} : vector<8x256xf32> to vector<8x32xf32>
    %409 = vector.extract_strided_slice %400 {offsets = [0, 224], sizes = [8, 32], strides = [1, 1]} : vector<8x256xf32> to vector<8x32xf32>
    %410 = arith.mulf %403, %382 : vector<8x32xf32>
    %411 = arith.mulf %402, %404 : vector<8x32xf32>
    %412 = arith.addf %410, %411 : vector<8x32xf32>
    %413 = arith.mulf %407, %385 : vector<8x32xf32>
    %414 = arith.mulf %406, %408 : vector<8x32xf32>
    %415 = arith.addf %413, %414 : vector<8x32xf32>
    %416 = math.tanh %412 : vector<8x32xf32>
    %417 = arith.mulf %405, %416 : vector<8x32xf32>
    %418 = math.tanh %415 : vector<8x32xf32>
    %419 = arith.mulf %409, %418 : vector<8x32xf32>
    %420 = vector.extract_strided_slice %264 {offsets = [40, 0], sizes = [8, 128], strides = [1, 1]} : vector<64x256xf32> to vector<8x128xf32>
    %421 = vector.extract_strided_slice %264 {offsets = [16, 128], sizes = [8, 128], strides = [1, 1]} : vector<64x256xf32> to vector<8x128xf32>
    %422 = tpu.concatenate %420, %421 in 1 : vector<8x128xf32>, vector<8x128xf32> -> vector<8x256xf32>
    %423 = tpu.concatenate %417, %419 in 1 : vector<8x32xf32>, vector<8x32xf32> -> vector<8x64xf32>
    %cst_48 = arith.constant dense<0.000000e+00> : vector<8x256xf32>
    %424 = tpu.matmul %423, %265, %cst_48 {dimension_numbers = #tpu.dot_dimension_numbers<[1], [0], [0], [1], [0, 0, 1, 1], [], []>} : vector<8x64xf32>, vector<64x256xf32>, vector<8x256xf32> -> vector<8x256xf32>
    %425 = arith.addf %422, %424 : vector<8x256xf32>
    %426 = arith.negf %425 : vector<8x256xf32>
    %427 = math.exp %426 : vector<8x256xf32>
    %cst_49 = arith.constant 1.000000e+00 : f32
    %428 = vector.broadcast %cst_49 : f32 to vector<8x256xf32>
    %429 = arith.addf %428, %427 : vector<8x256xf32>
    %430 = arith.divf %428, %429 : vector<8x256xf32>
    %431 = math.tanh %425 : vector<8x256xf32>
    %432 = vector.extract_strided_slice %430 {offsets = [0, 0], sizes = [8, 32], strides = [1, 1]} : vector<8x256xf32> to vector<8x32xf32>
    %433 = vector.extract_strided_slice %430 {offsets = [0, 32], sizes = [8, 32], strides = [1, 1]} : vector<8x256xf32> to vector<8x32xf32>
    %434 = vector.extract_strided_slice %431 {offsets = [0, 64], sizes = [8, 32], strides = [1, 1]} : vector<8x256xf32> to vector<8x32xf32>
    %435 = vector.extract_strided_slice %430 {offsets = [0, 96], sizes = [8, 32], strides = [1, 1]} : vector<8x256xf32> to vector<8x32xf32>
    %436 = vector.extract_strided_slice %430 {offsets = [0, 128], sizes = [8, 32], strides = [1, 1]} : vector<8x256xf32> to vector<8x32xf32>
    %437 = vector.extract_strided_slice %430 {offsets = [0, 160], sizes = [8, 32], strides = [1, 1]} : vector<8x256xf32> to vector<8x32xf32>
    %438 = vector.extract_strided_slice %431 {offsets = [0, 192], sizes = [8, 32], strides = [1, 1]} : vector<8x256xf32> to vector<8x32xf32>
    %439 = vector.extract_strided_slice %430 {offsets = [0, 224], sizes = [8, 32], strides = [1, 1]} : vector<8x256xf32> to vector<8x32xf32>
    %440 = arith.mulf %433, %412 : vector<8x32xf32>
    %441 = arith.mulf %432, %434 : vector<8x32xf32>
    %442 = arith.addf %440, %441 : vector<8x32xf32>
    %443 = arith.mulf %437, %415 : vector<8x32xf32>
    %444 = arith.mulf %436, %438 : vector<8x32xf32>
    %445 = arith.addf %443, %444 : vector<8x32xf32>
    %446 = math.tanh %442 : vector<8x32xf32>
    %447 = arith.mulf %435, %446 : vector<8x32xf32>
    %448 = math.tanh %445 : vector<8x32xf32>
    %449 = arith.mulf %439, %448 : vector<8x32xf32>
    %450 = vector.extract_strided_slice %264 {offsets = [48, 0], sizes = [8, 128], strides = [1, 1]} : vector<64x256xf32> to vector<8x128xf32>
    %451 = vector.extract_strided_slice %264 {offsets = [8, 128], sizes = [8, 128], strides = [1, 1]} : vector<64x256xf32> to vector<8x128xf32>
    %452 = tpu.concatenate %450, %451 in 1 : vector<8x128xf32>, vector<8x128xf32> -> vector<8x256xf32>
    %453 = tpu.concatenate %447, %449 in 1 : vector<8x32xf32>, vector<8x32xf32> -> vector<8x64xf32>
    %cst_50 = arith.constant dense<0.000000e+00> : vector<8x256xf32>
    %454 = tpu.matmul %453, %265, %cst_50 {dimension_numbers = #tpu.dot_dimension_numbers<[1], [0], [0], [1], [0, 0, 1, 1], [], []>} : vector<8x64xf32>, vector<64x256xf32>, vector<8x256xf32> -> vector<8x256xf32>
    %455 = arith.addf %452, %454 : vector<8x256xf32>
    %456 = arith.negf %455 : vector<8x256xf32>
    %457 = math.exp %456 : vector<8x256xf32>
    %cst_51 = arith.constant 1.000000e+00 : f32
    %458 = vector.broadcast %cst_51 : f32 to vector<8x256xf32>
    %459 = arith.addf %458, %457 : vector<8x256xf32>
    %460 = arith.divf %458, %459 : vector<8x256xf32>
    %461 = math.tanh %455 : vector<8x256xf32>
    %462 = vector.extract_strided_slice %460 {offsets = [0, 0], sizes = [8, 32], strides = [1, 1]} : vector<8x256xf32> to vector<8x32xf32>
    %463 = vector.extract_strided_slice %460 {offsets = [0, 32], sizes = [8, 32], strides = [1, 1]} : vector<8x256xf32> to vector<8x32xf32>
    %464 = vector.extract_strided_slice %461 {offsets = [0, 64], sizes = [8, 32], strides = [1, 1]} : vector<8x256xf32> to vector<8x32xf32>
    %465 = vector.extract_strided_slice %460 {offsets = [0, 96], sizes = [8, 32], strides = [1, 1]} : vector<8x256xf32> to vector<8x32xf32>
    %466 = vector.extract_strided_slice %460 {offsets = [0, 128], sizes = [8, 32], strides = [1, 1]} : vector<8x256xf32> to vector<8x32xf32>
    %467 = vector.extract_strided_slice %460 {offsets = [0, 160], sizes = [8, 32], strides = [1, 1]} : vector<8x256xf32> to vector<8x32xf32>
    %468 = vector.extract_strided_slice %461 {offsets = [0, 192], sizes = [8, 32], strides = [1, 1]} : vector<8x256xf32> to vector<8x32xf32>
    %469 = vector.extract_strided_slice %460 {offsets = [0, 224], sizes = [8, 32], strides = [1, 1]} : vector<8x256xf32> to vector<8x32xf32>
    %470 = arith.mulf %463, %442 : vector<8x32xf32>
    %471 = arith.mulf %462, %464 : vector<8x32xf32>
    %472 = arith.addf %470, %471 : vector<8x32xf32>
    %473 = arith.mulf %467, %445 : vector<8x32xf32>
    %474 = arith.mulf %466, %468 : vector<8x32xf32>
    %475 = arith.addf %473, %474 : vector<8x32xf32>
    %476 = math.tanh %472 : vector<8x32xf32>
    %477 = arith.mulf %465, %476 : vector<8x32xf32>
    %478 = math.tanh %475 : vector<8x32xf32>
    %479 = arith.mulf %469, %478 : vector<8x32xf32>
    %480 = vector.extract_strided_slice %264 {offsets = [56, 0], sizes = [8, 128], strides = [1, 1]} : vector<64x256xf32> to vector<8x128xf32>
    %481 = vector.extract_strided_slice %264 {offsets = [0, 128], sizes = [8, 128], strides = [1, 1]} : vector<64x256xf32> to vector<8x128xf32>
    %482 = tpu.concatenate %480, %481 in 1 : vector<8x128xf32>, vector<8x128xf32> -> vector<8x256xf32>
    %483 = tpu.concatenate %477, %479 in 1 : vector<8x32xf32>, vector<8x32xf32> -> vector<8x64xf32>
    %cst_52 = arith.constant dense<0.000000e+00> : vector<8x256xf32>
    %484 = tpu.matmul %483, %265, %cst_52 {dimension_numbers = #tpu.dot_dimension_numbers<[1], [0], [0], [1], [0, 0, 1, 1], [], []>} : vector<8x64xf32>, vector<64x256xf32>, vector<8x256xf32> -> vector<8x256xf32>
    %485 = arith.addf %482, %484 : vector<8x256xf32>
    %486 = arith.negf %485 : vector<8x256xf32>
    %487 = math.exp %486 : vector<8x256xf32>
    %cst_53 = arith.constant 1.000000e+00 : f32
    %488 = vector.broadcast %cst_53 : f32 to vector<8x256xf32>
    %489 = arith.addf %488, %487 : vector<8x256xf32>
    %490 = arith.divf %488, %489 : vector<8x256xf32>
    %491 = math.tanh %485 : vector<8x256xf32>
    %492 = vector.extract_strided_slice %490 {offsets = [0, 0], sizes = [8, 32], strides = [1, 1]} : vector<8x256xf32> to vector<8x32xf32>
    %493 = vector.extract_strided_slice %490 {offsets = [0, 32], sizes = [8, 32], strides = [1, 1]} : vector<8x256xf32> to vector<8x32xf32>
    %494 = vector.extract_strided_slice %491 {offsets = [0, 64], sizes = [8, 32], strides = [1, 1]} : vector<8x256xf32> to vector<8x32xf32>
    %495 = vector.extract_strided_slice %490 {offsets = [0, 96], sizes = [8, 32], strides = [1, 1]} : vector<8x256xf32> to vector<8x32xf32>
    %496 = vector.extract_strided_slice %490 {offsets = [0, 128], sizes = [8, 32], strides = [1, 1]} : vector<8x256xf32> to vector<8x32xf32>
    %497 = vector.extract_strided_slice %490 {offsets = [0, 160], sizes = [8, 32], strides = [1, 1]} : vector<8x256xf32> to vector<8x32xf32>
    %498 = vector.extract_strided_slice %491 {offsets = [0, 192], sizes = [8, 32], strides = [1, 1]} : vector<8x256xf32> to vector<8x32xf32>
    %499 = vector.extract_strided_slice %490 {offsets = [0, 224], sizes = [8, 32], strides = [1, 1]} : vector<8x256xf32> to vector<8x32xf32>
    %500 = arith.mulf %493, %472 : vector<8x32xf32>
    %501 = arith.mulf %492, %494 : vector<8x32xf32>
    %502 = arith.addf %500, %501 : vector<8x32xf32>
    %503 = arith.mulf %497, %475 : vector<8x32xf32>
    %504 = arith.mulf %496, %498 : vector<8x32xf32>
    %505 = arith.addf %503, %504 : vector<8x32xf32>
    %506 = math.tanh %502 : vector<8x32xf32>
    %507 = arith.mulf %495, %506 : vector<8x32xf32>
    %508 = math.tanh %505 : vector<8x32xf32>
    %509 = arith.mulf %499, %508 : vector<8x32xf32>
    %510 = tpu.concatenate %248, %250, %507, %509 in 1 : vector<8x32xf32>, vector<8x32xf32>, vector<8x32xf32>, vector<8x32xf32> -> vector<8x128xf32>
    %c0_54 = arith.constant 0 : index
    %c0_55 = arith.constant 0 : index
    %511 = vector.load %arg7[%c0_54, %c0_55] : memref<1x128xf32, #tpu.memory_space<vmem>>, vector<1x128xf32>
    %512 = vector.broadcast %511 : vector<1x128xf32> to vector<8x128xf32>
    %513 = arith.mulf %510, %512 : vector<8x128xf32>
    %cst_56 = arith.constant dense<0.000000e+00> : vector<8xf32>
    %514 = vector.multi_reduction <add>, %513, %cst_56 [1] : vector<8x128xf32> to vector<8xf32>
    %515 = vector.shape_cast %514 : vector<8xf32> to vector<8x1xf32>
    %c0_57 = arith.constant 0 : index
    %c0_58 = arith.constant 0 : index
    %516 = vector.load %arg8[%c0_57, %c0_58] : memref<1x1xf32, #tpu.memory_space<vmem>>, vector<1x1xf32>
    %517 = vector.broadcast %516 : vector<1x1xf32> to vector<8x1xf32>
    %518 = arith.addf %515, %517 : vector<8x1xf32>
    %519 = vector.extract_strided_slice %518 {offsets = [0, 0], sizes = [2, 1], strides = [1, 1]} : vector<8x1xf32> to vector<2x1xf32>
    %c0_59 = arith.constant 0 : index
    %c0_60 = arith.constant 0 : index
    %520 = vector.load %arg9[%c0_59, %c0_60] : memref<2x1xf32, #tpu.memory_space<vmem>>, vector<2x1xf32>
    tpu.vector_store %arg9[%c0_59, %c0_60], %519 {strides = array<i32>} : memref<2x1xf32, #tpu.memory_space<vmem>>, vector<2x1xf32>,
    return
  }
}

</mosaic_0001>

<bundles_post_ra>
// kernel: lstm_model_forward.1
= control target key start
LH: loop header
LB: loop body
LE: loop exit
PB: predicated region body
PF: predicated region fallthrough
CT: control target
= control target key end

     0   :  { %v3150_v3 = vmov 0.0   ;;  %vm58_vm0 = vcmask 130048   ;;  %v48_v39 = vlaneseq  ;;  %vm345_vm1 = vcmask 261120   ;;  %s3940_s1 = inlined_call_operand.vmem [shape: f32[16,256], index: 1, kind: input, shape index: {}]   ;;  %s3941_s2 = inlined_call_operand.vmem [shape: f32[64,256], index: 2, kind: input, shape index: {}]   ;;  %s3942_s0 = inlined_call_operand.vmem [shape: f32[64,16], index: 0, kind: input, shape index: {}]   ;;  %s3943_s3 = inlined_call_operand.vmem [shape: f32[1,256], index: 3, kind: input, shape index: {}]   ;;  %s3944_s4 = inlined_call_operand.vmem [shape: f32[64,256], index: 4, kind: input, shape index: {}]   ;;  %s3945_s5 = inlined_call_operand.vmem [shape: f32[64,256], index: 5, kind: input, shape index: {}]   ;;  %s3946_s6 = inlined_call_operand.vmem [shape: f32[1,256], index: 6, kind: input, shape index: {}]   ;;  %s3947_s8 = inlined_call_operand.<no memory space> [shape: f32[1,1], index: 8, kind: input, shape index: {}]   ;;  %s3948_s7 = inlined_call_operand.vmem [shape: f32[1,128], index: 7, kind: input, shape index: {}]   ;;  %s3949_s9 = inlined_call_operand.vmem [shape: f32[2,1], index: 9, kind: output, shape index: {}]  }
   0x1   :  { %v43_v0 = vld [vmem:[%s3940_s1 + $0x8] sm:$0xff]  ;;  %v45_v1 = vld [vmem:[%s3940_s1 + $0x18] sm:$0xff]  ;;  %147 = vmatprep.mubr.f32.mxu0 %v3150_v3  ;;  %280 = vmatprep.mubr.f32.mxu1 %v3150_v3  ;;  %v42_v6 = vld [vmem:[%s3940_s1] sm:$0xff]  ;;  %vm212_vm2 = vcmask 523264   ;;  %vm2524_vm3 = vcmask 785408   ;;  %vm2544_vm4 = vcmask 1024  }
   0x2   :  { %v197_v2 = vld [vmem:[%s3941_s2 + $0x8] sm:$0xff]  ;;  %v2614_v4 = vpack.c.bf16 %v45_v1, %v43_v0  ;;  %v199_v5 = vld [vmem:[%s3941_s2 + $0x18] sm:$0xff]  ;;  %v44_v7 = vld [vmem:[%s3940_s1 + $0x10] sm:$0xff]  ;;  %v3350_v40 = vshrl.u32 %v48_v39, 7 }
   0x3   :  { %v3224_v8 = vpack.c.bf16 %v199_v5, %v197_v2  ;;  %v2616_v9 = vpack.c.bf16 %v44_v7, %v42_v6  ;;  %v196_v10 = vld [vmem:[%s3941_s2] sm:$0xff]  ;;  %v198_v11 = vld [vmem:[%s3941_s2 + $0x10] sm:$0xff]  ;;  %v201_v13 = vld [vmem:[%s3941_s2 + $0x28] sm:$0xff] }
   0x4   :  { %2615 = vmatprep.subr.bf16.mxu0 %v2614_v4  ;;  %v3232_v12 = vpack.c.bf16 %v198_v11, %v196_v10  ;;  %v203_v14 = vld [vmem:[%s3941_s2 + $0x38] sm:$0xff]  ;;  %v200_v15 = vld [vmem:[%s3941_s2 + $0x20] sm:$0xff]  ;;  %v202_v18 = vld [vmem:[%s3941_s2 + $0x30] sm:$0xff]  ;;  %v54_v41 = vsub.s32 1, %v3350_v40  ;;  %v50_v44 = vsub.s32 0, %v3350_v40 }
   0x5   :  { %2619 = vmatprep.subr.bf16.mxu1 %v3224_v8  ;;  %2617 = vmatpush1.bf16.msra.mxu0 %v2616_v9  ;;  %v34_v16 = vld [vmem:[%s3942_s0] sm:$0xff]  ;;  %v3247_v17 = vpack.c.bf16 %v203_v14, %v201_v13  ;;  %v205_v19 = vld [vmem:[%s3941_s2 + $0x48] sm:$0xff]  ;;  %v3256_v20 = vpack.c.bf16 %v202_v18, %v200_v15  ;;  %v207_v21 = vld [vmem:[%s3941_s2 + $0x58] sm:$0xff] }
   0x6   :  { %2621 = vmatpush1.bf16.msra.mxu1 %v3232_v12  ;;  %2651 = vmatprep.subr.bf16.mxu0 %v3224_v8  ;;  %v3263_v22 = vpack.c.bf16 %v207_v21, %v205_v19  ;;  %v204_v23 = vld [vmem:[%s3941_s2 + $0x40] sm:$0xff]  ;;  %v206_v24 = vld [vmem:[%s3941_s2 + $0x50] sm:$0xff]  ;;  %v209_v25 = vld [vmem:[%s3941_s2 + $0x68] sm:$0xff] }
   0x7   :  { %2623 = vmatprep.subr.bf16.mxu1 %v3247_v17  ;;  %v211_v26 = vld [vmem:[%s3941_s2 + $0x78] sm:$0xff]  ;;  %v35_v27 = vld [vmem:[%s3942_s0 + $0x8] sm:$0xff]  ;;  %v3284_v28 = vpack.c.bf16 %v206_v24, %v204_v23  ;;  %v208_v30 = vld [vmem:[%s3941_s2 + $0x60] sm:$0xff] }
   0x8   :  { %2550 = vmatmul.mubr.msk.f32.vlgmr.msra.gmra.mrb[0].mxu0 %vm58_vm0, %v34_v16  ;;  %v3288_v29 = vpack.c.bf16 %v211_v26, %v209_v25  ;;  %v210_v31 = vld [vmem:[%s3941_s2 + $0x70] sm:$0xff]  ;;  %v37_v34 = vld [vmem:[%s3942_s0 + $0x18] sm:$0xff]  ;;  %v38_v35 = vld [vmem:[%s3942_s0 + $0x20] sm:$0xff] }
   0x9   :  { %153 = vmatprep.mubr.f32.mxu0 %v3150_v3  ;;  %2653 = vmatpush1.bf16.msra.mxu0 %v3232_v12  ;;  %v36_v32 = vld [vmem:[%s3942_s0 + $0x10] sm:$0xff]  ;;  %v3303_v33 = vpack.c.bf16 %v210_v31, %v208_v30  ;;  %v39_v36 = vld [vmem:[%s3942_s0 + $0x28] sm:$0xff]  ;;  %v41_v38 = vld [vmem:[%s3942_s0 + $0x38] sm:$0xff] }
   0xa   :  { %2625 = vmatpush1.bf16.msra.mxu1 %v3256_v20  ;;  %2655 = vmatprep.subr.bf16.mxu0 %v3247_v17  ;;  %v40_v37 = vld [vmem:[%s3942_s0 + $0x30] sm:$0xff]  ;;  %v46_v42 = vld [vmem:[%s3943_s3] sm:$0x3]  ;;  %s3151_s0 = smov 64   ;;  %s3152_s3 = smov 32  }
   0xb   :  { %2627 = vmatprep.subr.bf16.mxu1 %v3263_v22  ;;  %v55_v43 = vrot.slane %v46_v42, %v54_v41  ;;  %v51_v48 = vrot.slane %v46_v42, %v50_v44 }
   0xc   :  { %2551 = vmatmul.mubr.msk.f32.gmra.mrb[2].mxu0 %vm58_vm0, %v35_v27 }
   0xd   :  { %159 = vmatprep.mubr.f32.mxu0 %v3150_v3  ;;  %2657 = vmatpush1.bf16.msra.mxu0 %v3256_v20 }
   0xe   :  { %2629 = vmatpush1.bf16.msra.mxu1 %v3284_v28  ;;  %2659 = vmatprep.subr.bf16.mxu0 %v3263_v22 }
   0xf   :  { %2631 = vmatprep.subr.bf16.mxu1 %v3288_v29 }
  0x10   :  { %2552 = vmatmul.mubr.msk.f32.gmra.mrb[4].mxu0 %vm58_vm0, %v36_v32 }
  0x11   :  { %165 = vmatprep.mubr.f32.mxu0 %v3150_v3  ;;  %2661 = vmatpush1.bf16.msra.mxu0 %v3284_v28 }
  0x12   :  { %2633 = vmatpush1.bf16.msra.mxu1 %v3303_v33  ;;  %2663 = vmatprep.subr.bf16.mxu0 %v3288_v29 }
  0x13   :  { %2635 = vmatprep.subr.bf16.mxu1 %v3224_v8 }
  0x14   :  { %2553 = vmatmul.mubr.msk.f32.gmra.mrb[6].mxu0 %vm58_vm0, %v37_v34 }
  0x15   :  { %281 = vmatmul.mubr.f32.vlgmr.msra.gmra.mrb[0].mxu1 %v3150_v3  ;;  %171 = vmatprep.mubr.f32.mxu0 %v3150_v3 }
  0x16   :  { %2637 = vmatpush1.bf16.msra.mxu1 %v3232_v12  ;;  %414 = vmatprep.mubr.f32.mxu1 %v3150_v3 }
  0x17   :  { %2639 = vmatprep.subr.bf16.mxu1 %v3247_v17  ;;  %2665 = vmatpush1.bf16.msra.mxu0 %v3303_v33 }
  0x18   :  { %2554 = vmatmul.mubr.msk.f32.gmra.mrb[8].mxu0 %vm58_vm0, %v38_v35  ;;  %2683 = vmatprep.subr.bf16.mxu0 %v3224_v8 }
  0x19   :  { %177 = vmatprep.mubr.f32.mxu0 %v3150_v3 }
  0x1a   :  { %2641 = vmatpush1.bf16.msra.mxu1 %v3256_v20 }
  0x1b   :  { %2643 = vmatprep.subr.bf16.mxu1 %v3263_v22 }
  0x1c   :  { %2555 = vmatmul.mubr.msk.f32.gmra.mrb[10].mxu0 %vm58_vm0, %v39_v36 }
  0x1d   :  { %183 = vmatprep.mubr.f32.mxu0 %v3150_v3 }
  0x1e   :  { %2645 = vmatpush1.bf16.msra.mxu1 %v3284_v28 }
  0x1f   :  { %2647 = vmatprep.subr.bf16.mxu1 %v3288_v29 }
  0x20   :  { %2556 = vmatmul.mubr.msk.f32.gmra.mrb[12].mxu0 %vm58_vm0, %v40_v37 }
  0x21   :  { %189 = vmatprep.mubr.f32.mxu0 %v3150_v3 }
  0x22   :  { %2649 = vmatpush1.bf16.msra.mxu1 %v3303_v33 }
  0x23   :  { %2667 = vmatprep.subr.bf16.mxu1 %v3224_v8 }
  0x24   :  { %2557 = vmatmul.mubr.msk.f32.gmra.mrb[14].mxu0 %vm58_vm0, %v41_v38 }
  0x25   :  { %547 = vmatprep.mubr.f32.mxu0 %v3150_v3 }
  0xdb   :  { %v149_v45 = vpop.f32.mrb[0].mxu0 }
  0xdc   :  { %v151_v46 = vpop.f32.mrb[1].mxu0  ;;  %v150_v57 = vadd.f32 %v149_v45, %v51_v48 }
  0xdd   :  { %v3359_v47 = vadd.f32 %v151_v46, %v55_v43 }
  0xdf   :  { %v155_v49 = vpop.f32.mrb[2].mxu0 }
  0xe0   :  { %v3363_v50 = vadd.f32 %v155_v49, %v51_v48  ;;  %v157_v51 = vpop.f32.mrb[3].mxu0 }
  0xe1   :  { %v3365_v52 = vadd.f32 %v157_v51, %v55_v43 }
  0xe3   :  { %v161_v53 = vpop.f32.mrb[4].mxu0 }
  0xe4   :  { %v3367_v54 = vadd.f32 %v161_v53, %v51_v48  ;;  %v163_v55 = vpop.f32.mrb[5].mxu0 }
  0xe5   :  { %v3369_v56 = vadd.f32 %v163_v55, %v55_v43 }
  0xe7   :  { %v167_v58 = vpop.f32.mrb[6].mxu0 }
  0xe8   :  { %v3371_v59 = vadd.f32 %v167_v58, %v51_v48  ;;  %v282_v60 = vpop.f32.mrb[0].mxu1  ;;  %v169_v61 = vpop.f32.mrb[7].mxu0 }
  0xe9   :  { %v287_v62 = vadd.f32 %v282_v60, %v150_v57  ;;  %v3373_v63 = vadd.f32 %v169_v61, %v55_v43  ;;  %v284_v0 = vpop.f32.mrb[1].mxu1 }
  0xeb   :  { %2894 = vtanh.f32 %v287_v62  ;;  %v173_v1 = vpop.f32.mrb[8].mxu0  ;;  %v2558_v26 = vmul.f32 -1.442695, %v287_v62 }
  0xec   :  { %v3375_v2 = vadd.f32 %v173_v1, %v51_v48  ;;  %v175_v4 = vpop.f32.mrb[9].mxu0 }
  0xed   :  { %v3377_v5 = vadd.f32 %v175_v4, %v55_v43 }
  0xef   :  { %v179_v6 = vpop.f32.mrb[10].mxu0 }
  0xf0   :  { %v3379_v7 = vadd.f32 %v179_v6, %v51_v48  ;;  %v181_v9 = vpop.f32.mrb[11].mxu0 }
  0xf1   :  { %v3381_v10 = vadd.f32 %v181_v9, %v55_v43 }
  0xf3   :  { %v185_v11 = vpop.f32.mrb[12].mxu0 }
  0xf4   :  { %v3383_v13 = vadd.f32 %v185_v11, %v51_v48  ;;  %v187_v14 = vpop.f32.mrb[13].mxu0 }
  0xf5   :  { %v2895_v15 = vpop.eup %2894  ;;  %v3385_v16 = vadd.f32 %v187_v14, %v55_v43 }
  0xf6   :  { %305 = vrot.lane.b32.xlu0 %v2895_v15, %s3151_s0 }
  0xf7   :  { %v191_v18 = vpop.f32.mrb[14].mxu0 }
  0xf8   :  { %v3388_v19 = vadd.f32 %v191_v18, %v51_v48  ;;  %v193_v21 = vpop.f32.mrb[15].mxu0 }
  0xf9   :  { %v194_v23 = vadd.f32 %v193_v21, %v55_v43 }
  0xfb   :  { %v288_v24 = vadd.f32 %v284_v0, %v194_v23 }
  0xfd   :  { %2896 = vtanh.f32 %v288_v24  ;;  %v2559_v31 = vmul.f32 -1.442695, %v288_v24 }
  0xfe   :  { %2898 = vpow2.f32 %v2558_v26 }
 0x107   :  { %v2897_v25 = vpop.eup %2896 }
 0x108   :  { %316 = vrot.lane.b32.xlu0 %v2897_v25, %s3151_s0  ;;  %v2899_v27 = vpop.eup %2898 }
 0x109   :  { %v295_v30 = vadd.f32 1.0, %v2899_v27 }
 0x10b   :  { %2900 = vrcp.f32 %v295_v30 }
 0x10c   :  { %2902 = vpow2.f32 %v2559_v31 }
 0x115   :  { %v2901_v32 = vpop.eup %2900 }
 0x116   :  { %v2903_v35 = vpop.eup %2902  ;;  %v303_v43 = vmul.f32 0.0, %v2901_v32 }
 0x117   :  { %v296_v37 = vadd.f32 1.0, %v2903_v35 }
 0x119   :  { %2904 = vrcp.f32 %v296_v37 }
 0x123   :  { %v2905_v38 = vpop.eup %2904 }
 0x124   :  { %v314_v49 = vmul.f32 0.0, %v2905_v38 }
 0x168   :  { %v306_v34 = vpop.permute.xlu0 %305 }
 0x169   :  { %v308_v36 = vmul.f32 %v2901_v32, %v306_v34 }
 0x16b   :  { %310 = vrot.lane.b32.xlu1 %v308_v36, %s3152_s3 }
 0x17a   :  { %v317_v39 = vpop.permute.xlu0 %316 }
 0x17b   :  { %v319_v42 = vmul.f32 %v2905_v38, %v317_v39 }
 0x17d   :  { %321 = vrot.lane.b32.xlu1 %v319_v42, %s3152_s3 }
 0x1dd   :  { %v311_v45 = vpop.permute.xlu1 %310 }
 0x1de   :  { %v313_v46 = vadd.f32 %v311_v45, %v303_v43 }
 0x1e0   :  { %2906 = vtanh.f32 %v313_v46 }
 0x1ea   :  { %v2907_v48 = vpop.eup %2906 }
 0x1eb   :  { %327 = vrot.lane.b32.xlu0 %v2907_v48, %s3151_s0 }
 0x1ef   :  { %v322_v51 = vpop.permute.xlu1 %321 }
 0x1f0   :  { %v324_v53 = vadd.f32 %v322_v51, %v314_v49 }
 0x1f2   :  { %2908 = vtanh.f32 %v324_v53 }
 0x1fc   :  { %v2909_v55 = vpop.eup %2908 }
 0x1fd   :  { %333 = vrot.lane.b32.xlu1 %v2909_v55, %s3151_s0 }
 0x25d   :  { %v328_v57 = vpop.permute.xlu0 %327 }
 0x25e   :  { %v330_v58 = vmul.f32 %v2901_v32, %v328_v57 }
 0x260   :  { %338 = vrot.lane.b32.xlu0 %v330_v58, %s3152_s3 }
 0x26f   :  { %v334_v60 = vpop.permute.xlu1 %333 }
 0x270   :  { %v336_v61 = vmul.f32 %v2905_v38, %v334_v60 }
 0x272   :  { %342 = vrot.lane.b32.xlu1 %v336_v61, %s3151_s0 }
 0x2d2   :  { %v3397_v62 = vpop.permute.xlu0 %338 }
 0x2e4   :  { %v3399_v0 = vpop.permute.xlu1 %342 }
 0x2e5   :  { %v346_v1 = vsel %vm345_vm1, %v3397_v62, %v3399_v0 }
 0x2e6   :  { %2560 = vmatmul.mubr.msk.f32.vlgmr.msra.gmra.mrb[2].mxu1 %vm212_vm2, %v346_v1 }
 0x2e7   :  { %2669 = vmatpush1.bf16.msra.mxu1 %v3232_v12  ;;  %680 = vmatprep.mubr.f32.mxu1 %v3150_v3 }
 0x2e8   :  { %2671 = vmatprep.subr.bf16.mxu1 %v3247_v17 }
 0x2eb   :  { %2673 = vmatpush1.bf16.msra.mxu1 %v3256_v20 }
 0x2ec   :  { %2675 = vmatprep.subr.bf16.mxu1 %v3263_v22 }
 0x2ef   :  { %2677 = vmatpush1.bf16.msra.mxu1 %v3284_v28 }
 0x2f0   :  { %2679 = vmatprep.subr.bf16.mxu1 %v3288_v29 }
 0x2f3   :  { %2681 = vmatpush1.bf16.msra.mxu1 %v3303_v33 }
 0x2f4   :  { %2699 = vmatprep.subr.bf16.mxu1 %v3224_v8 }
 0x3b9   :  { %v416_v4 = vpop.f32.mrb[2].mxu1 }
 0x3ba   :  { %v421_v6 = vadd.f32 %v416_v4, %v3363_v50  ;;  %v418_v9 = vpop.f32.mrb[3].mxu1 }
 0x3bb   :  { %v422_v11 = vadd.f32 %v418_v9, %v3385_v16 }
 0x3bc   :  { %2910 = vtanh.f32 %v421_v6  ;;  %v2561_v18 = vmul.f32 -1.442695, %v421_v6 }
 0x3bd   :  { %2912 = vtanh.f32 %v422_v11  ;;  %v2562_v21 = vmul.f32 -1.442695, %v422_v11 }
 0x3be   :  { %2914 = vpow2.f32 %v2561_v18 }
 0x3bf   :  { %2916 = vpow2.f32 %v2562_v21 }
 0x3c6   :  { %v2911_v14 = vpop.eup %2910 }
 0x3c7   :  { %v2913_v15 = vpop.eup %2912  ;;  %439 = vrot.lane.b32.xlu0 %v2911_v14, %s3151_s0 }
 0x3c8   :  { %450 = vrot.lane.b32.xlu1 %v2913_v15, %s3151_s0  ;;  %v2915_v23 = vpop.eup %2914 }
 0x3c9   :  { %v2917_v24 = vpop.eup %2916  ;;  %v429_v25 = vadd.f32 1.0, %v2915_v23 }
 0x3ca   :  { %v430_v26 = vadd.f32 1.0, %v2917_v24 }
 0x3cb   :  { %2918 = vrcp.f32 %v429_v25 }
 0x3cc   :  { %2920 = vrcp.f32 %v430_v26 }
 0x3d5   :  { %v2919_v50 = vpop.eup %2918 }
 0x3d6   :  { %v2921_v27 = vpop.eup %2920  ;;  %v437_v34 = vmul.f32 %v2919_v50, %v313_v46 }
 0x3d7   :  { %v448_v36 = vmul.f32 %v2921_v27, %v324_v53 }
 0x439   :  { %v440_v16 = vpop.permute.xlu0 %439 }
 0x43a   :  { %v442_v30 = vmul.f32 %v2919_v50, %v440_v16  ;;  %v451_v31 = vpop.permute.xlu1 %450 }
 0x43b   :  { %v453_v32 = vmul.f32 %v2921_v27, %v451_v31 }
 0x43c   :  { %444 = vrot.lane.b32.xlu0 %v442_v30, %s3152_s3 }
 0x43d   :  { %455 = vrot.lane.b32.xlu1 %v453_v32, %s3152_s3 }
 0x4ae   :  { %v445_v35 = vpop.permute.xlu0 %444 }
 0x4af   :  { %v447_v37 = vadd.f32 %v445_v35, %v437_v34  ;;  %v456_v38 = vpop.permute.xlu1 %455 }
 0x4b0   :  { %v458_v39 = vadd.f32 %v456_v38, %v448_v36 }
 0x4b1   :  { %2922 = vtanh.f32 %v447_v37 }
 0x4b2   :  { %2924 = vtanh.f32 %v458_v39 }
 0x4bb   :  { %v2923_v42 = vpop.eup %2922 }
 0x4bc   :  { %v2925_v43 = vpop.eup %2924  ;;  %461 = vrot.lane.b32.xlu0 %v2923_v42, %s3151_s0 }
 0x4bd   :  { %467 = vrot.lane.b32.xlu1 %v2925_v43, %s3151_s0 }
 0x52e   :  { %v462_v45 = vpop.permute.xlu0 %461 }
 0x52f   :  { %v464_v48 = vmul.f32 %v2919_v50, %v462_v45  ;;  %v468_v49 = vpop.permute.xlu1 %467 }
 0x530   :  { %v470_v51 = vmul.f32 %v2921_v27, %v468_v49 }
 0x531   :  { %472 = vrot.lane.b32.xlu0 %v464_v48, %s3152_s3 }
 0x532   :  { %476 = vrot.lane.b32.xlu1 %v470_v51, %s3151_s0 }
 0x5a3   :  { %v3424_v46 = vpop.permute.xlu0 %472 }
 0x5a4   :  { %v3426_v53 = vpop.permute.xlu1 %476 }
 0x5a5   :  { %v479_v55 = vsel %vm345_vm1, %v3424_v46, %v3426_v53 }
 0x5a6   :  { %2563 = vmatmul.mubr.msk.f32.vlgmr.msra.gmra.mrb[16].mxu0 %vm212_vm2, %v479_v55 }
 0x5a7   :  { %2685 = vmatpush1.bf16.msra.mxu0 %v3232_v12  ;;  %813 = vmatprep.mubr.f32.mxu0 %v3150_v3 }
 0x5a8   :  { %2687 = vmatprep.subr.bf16.mxu0 %v3247_v17 }
 0x5ab   :  { %2689 = vmatpush1.bf16.msra.mxu0 %v3256_v20 }
 0x5ac   :  { %2691 = vmatprep.subr.bf16.mxu0 %v3263_v22 }
 0x5af   :  { %2693 = vmatpush1.bf16.msra.mxu0 %v3284_v28 }
 0x5b0   :  { %2695 = vmatprep.subr.bf16.mxu0 %v3288_v29 }
 0x5b3   :  { %2697 = vmatpush1.bf16.msra.mxu0 %v3303_v33 }
 0x5b4   :  { %2715 = vmatprep.subr.bf16.mxu0 %v3224_v8 }
 0x679   :  { %v549_v57 = vpop.f32.mrb[16].mxu0 }
 0x67a   :  { %v554_v58 = vadd.f32 %v549_v57, %v3367_v54  ;;  %v551_v60 = vpop.f32.mrb[17].mxu0 }
 0x67b   :  { %v555_v61 = vadd.f32 %v551_v60, %v3381_v10 }
 0x67c   :  { %2926 = vtanh.f32 %v554_v58  ;;  %v2564_v6 = vmul.f32 -1.442695, %v554_v58 }
 0x67d   :  { %2928 = vtanh.f32 %v555_v61  ;;  %v2565_v9 = vmul.f32 -1.442695, %v555_v61 }
 0x67e   :  { %2930 = vpow2.f32 %v2564_v6 }
 0x67f   :  { %2932 = vpow2.f32 %v2565_v9 }
 0x686   :  { %v2927_v1 = vpop.eup %2926 }
 0x687   :  { %v2929_v4 = vpop.eup %2928  ;;  %572 = vrot.lane.b32.xlu0 %v2927_v1, %s3151_s0 }
 0x688   :  { %583 = vrot.lane.b32.xlu1 %v2929_v4, %s3151_s0  ;;  %v2931_v11 = vpop.eup %2930 }
 0x689   :  { %v2933_v14 = vpop.eup %2932  ;;  %v562_v15 = vadd.f32 1.0, %v2931_v11 }
 0x68a   :  { %v563_v18 = vadd.f32 1.0, %v2933_v14 }
 0x68b   :  { %2934 = vrcp.f32 %v562_v15 }
 0x68c   :  { %2936 = vrcp.f32 %v563_v18 }
 0x695   :  { %v2935_v54 = vpop.eup %2934 }
 0x696   :  { %v2937_v21 = vpop.eup %2936  ;;  %v570_v26 = vmul.f32 %v2935_v54, %v447_v37 }
 0x697   :  { %v581_v16 = vmul.f32 %v2937_v21, %v458_v39 }
 0x6f9   :  { %v573_v10 = vpop.permute.xlu0 %572 }
 0x6fa   :  { %v575_v23 = vmul.f32 %v2935_v54, %v573_v10  ;;  %v584_v24 = vpop.permute.xlu1 %583 }
 0x6fb   :  { %v586_v25 = vmul.f32 %v2937_v21, %v584_v24 }
 0x6fc   :  { %577 = vrot.lane.b32.xlu0 %v575_v23, %s3152_s3 }
 0x6fd   :  { %588 = vrot.lane.b32.xlu1 %v586_v25, %s3152_s3 }
 0x76e   :  { %v578_v50 = vpop.permute.xlu0 %577 }
 0x76f   :  { %v580_v27 = vadd.f32 %v578_v50, %v570_v26  ;;  %v589_v30 = vpop.permute.xlu1 %588 }
 0x770   :  { %v591_v31 = vadd.f32 %v589_v30, %v581_v16 }
 0x771   :  { %2938 = vtanh.f32 %v580_v27 }
 0x772   :  { %2940 = vtanh.f32 %v591_v31 }
 0x77b   :  { %v2939_v32 = vpop.eup %2938 }
 0x77c   :  { %v2941_v34 = vpop.eup %2940  ;;  %594 = vrot.lane.b32.xlu0 %v2939_v32, %s3151_s0 }
 0x77d   :  { %600 = vrot.lane.b32.xlu1 %v2941_v34, %s3151_s0 }
 0x7ee   :  { %v595_v35 = vpop.permute.xlu0 %594 }
 0x7ef   :  { %v597_v36 = vmul.f32 %v2935_v54, %v595_v35  ;;  %v601_v38 = vpop.permute.xlu1 %600 }
 0x7f0   :  { %v603_v42 = vmul.f32 %v2937_v21, %v601_v38 }
 0x7f1   :  { %605 = vrot.lane.b32.xlu0 %v597_v36, %s3152_s3 }
 0x7f2   :  { %609 = vrot.lane.b32.xlu1 %v603_v42, %s3151_s0 }
 0x863   :  { %v3451_v37 = vpop.permute.xlu0 %605 }
 0x864   :  { %v3453_v39 = vpop.permute.xlu1 %609 }
 0x865   :  { %v612_v43 = vsel %vm345_vm1, %v3451_v37, %v3453_v39 }
 0x866   :  { %2566 = vmatmul.mubr.msk.f32.vlgmr.msra.gmra.mrb[4].mxu1 %vm212_vm2, %v612_v43 }
 0x867   :  { %2701 = vmatpush1.bf16.msra.mxu1 %v3232_v12  ;;  %946 = vmatprep.mubr.f32.mxu1 %v3150_v3 }
 0x868   :  { %2703 = vmatprep.subr.bf16.mxu1 %v3247_v17 }
 0x86b   :  { %2705 = vmatpush1.bf16.msra.mxu1 %v3256_v20 }
 0x86c   :  { %2707 = vmatprep.subr.bf16.mxu1 %v3263_v22 }
 0x86f   :  { %2709 = vmatpush1.bf16.msra.mxu1 %v3284_v28 }
 0x870   :  { %2711 = vmatprep.subr.bf16.mxu1 %v3288_v29 }
 0x873   :  { %2713 = vmatpush1.bf16.msra.mxu1 %v3303_v33 }
 0x874   :  { %2731 = vmatprep.subr.bf16.mxu1 %v3224_v8 }
 0x939   :  { %v682_v45 = vpop.f32.mrb[4].mxu1 }
 0x93a   :  { %v687_v48 = vadd.f32 %v682_v45, %v3371_v59  ;;  %v684_v49 = vpop.f32.mrb[5].mxu1 }
 0x93b   :  { %v688_v51 = vadd.f32 %v684_v49, %v3377_v5 }
 0x93c   :  { %2942 = vtanh.f32 %v687_v48  ;;  %v2567_v58 = vmul.f32 -1.442695, %v687_v48 }
 0x93d   :  { %2944 = vtanh.f32 %v688_v51  ;;  %v2568_v60 = vmul.f32 -1.442695, %v688_v51 }
 0x93e   :  { %2946 = vpow2.f32 %v2567_v58 }
 0x93f   :  { %2948 = vpow2.f32 %v2568_v60 }
 0x946   :  { %v2943_v55 = vpop.eup %2942 }
 0x947   :  { %v2945_v57 = vpop.eup %2944  ;;  %705 = vrot.lane.b32.xlu0 %v2943_v55, %s3151_s0 }
 0x948   :  { %716 = vrot.lane.b32.xlu1 %v2945_v57, %s3151_s0  ;;  %v2947_v61 = vpop.eup %2946 }
 0x949   :  { %v2949_v8 = vpop.eup %2948  ;;  %v695_v1 = vadd.f32 1.0, %v2947_v61 }
 0x94a   :  { %v696_v4 = vadd.f32 1.0, %v2949_v8 }
 0x94b   :  { %2950 = vrcp.f32 %v695_v1 }
 0x94c   :  { %2952 = vrcp.f32 %v696_v4 }
 0x955   :  { %v2951_v59 = vpop.eup %2950 }
 0x956   :  { %v2953_v6 = vpop.eup %2952  ;;  %v703_v15 = vmul.f32 %v2951_v59, %v580_v27 }
 0x957   :  { %v714_v54 = vmul.f32 %v2953_v6, %v591_v31 }
 0x9b9   :  { %v706_v5 = vpop.permute.xlu0 %705 }
 0x9ba   :  { %v708_v9 = vmul.f32 %v2951_v59, %v706_v5  ;;  %v717_v11 = vpop.permute.xlu1 %716 }
 0x9bb   :  { %v719_v14 = vmul.f32 %v2953_v6, %v717_v11 }
 0x9bc   :  { %710 = vrot.lane.b32.xlu0 %v708_v9, %s3152_s3 }
 0x9bd   :  { %721 = vrot.lane.b32.xlu1 %v719_v14, %s3152_s3 }
 0xa2e   :  { %v711_v18 = vpop.permute.xlu0 %710 }
 0xa2f   :  { %v713_v10 = vadd.f32 %v711_v18, %v703_v15  ;;  %v722_v21 = vpop.permute.xlu1 %721 }
 0xa30   :  { %v724_v23 = vadd.f32 %v722_v21, %v714_v54 }
 0xa31   :  { %2954 = vtanh.f32 %v713_v10 }
 0xa32   :  { %2956 = vtanh.f32 %v724_v23 }
 0xa3b   :  { %v2955_v24 = vpop.eup %2954 }
 0xa3c   :  { %v2957_v25 = vpop.eup %2956  ;;  %727 = vrot.lane.b32.xlu0 %v2955_v24, %s3151_s0 }
 0xa3d   :  { %733 = vrot.lane.b32.xlu1 %v2957_v25, %s3151_s0 }
 0xaae   :  { %v728_v26 = vpop.permute.xlu0 %727 }
 0xaaf   :  { %v730_v50 = vmul.f32 %v2951_v59, %v728_v26  ;;  %v734_v16 = vpop.permute.xlu1 %733 }
 0xab0   :  { %v736_v30 = vmul.f32 %v2953_v6, %v734_v16 }
 0xab1   :  { %738 = vrot.lane.b32.xlu0 %v730_v50, %s3152_s3 }
 0xab2   :  { %742 = vrot.lane.b32.xlu1 %v736_v30, %s3151_s0 }
 0xb23   :  { %v3478_v27 = vpop.permute.xlu0 %738 }
 0xb24   :  { %v3480_v31 = vpop.permute.xlu1 %742 }
 0xb25   :  { %v745_v32 = vsel %vm345_vm1, %v3478_v27, %v3480_v31 }
 0xb26   :  { %2569 = vmatmul.mubr.msk.f32.vlgmr.msra.gmra.mrb[18].mxu0 %vm212_vm2, %v745_v32 }
 0xb27   :  { %2717 = vmatpush1.bf16.msra.mxu0 %v3232_v12  ;;  %1079 = vmatprep.mubr.f32.mxu0 %v3150_v3 }
 0xb28   :  { %2719 = vmatprep.subr.bf16.mxu0 %v3247_v17 }
 0xb2b   :  { %2721 = vmatpush1.bf16.msra.mxu0 %v3256_v20 }
 0xb2c   :  { %2723 = vmatprep.subr.bf16.mxu0 %v3263_v22 }
 0xb2f   :  { %2725 = vmatpush1.bf16.msra.mxu0 %v3284_v28 }
 0xb30   :  { %2727 = vmatprep.subr.bf16.mxu0 %v3288_v29 }
 0xb33   :  { %2729 = vmatpush1.bf16.msra.mxu0 %v3303_v33 }
 0xbf9   :  { %v815_v34 = vpop.f32.mrb[18].mxu0 }
 0xbfa   :  { %v820_v35 = vadd.f32 %v815_v34, %v3375_v2  ;;  %v817_v36 = vpop.f32.mrb[19].mxu0 }
 0xbfb   :  { %v821_v38 = vadd.f32 %v817_v36, %v3373_v63 }
 0xbfc   :  { %2958 = vtanh.f32 %v820_v35  ;;  %v2570_v45 = vmul.f32 -1.442695, %v820_v35 }
 0xbfd   :  { %2960 = vtanh.f32 %v821_v38  ;;  %v2571_v48 = vmul.f32 -1.442695, %v821_v38 }
 0xbfe   :  { %2962 = vpow2.f32 %v2570_v45 }
 0xbff   :  { %2964 = vpow2.f32 %v2571_v48 }
 0xc06   :  { %v2959_v42 = vpop.eup %2958 }
 0xc07   :  { %v2961_v43 = vpop.eup %2960  ;;  %838 = vrot.lane.b32.xlu0 %v2959_v42, %s3151_s0 }
 0xc08   :  { %849 = vrot.lane.b32.xlu1 %v2961_v43, %s3151_s0  ;;  %v2963_v49 = vpop.eup %2962 }
 0xc09   :  { %v2965_v51 = vpop.eup %2964  ;;  %v828_v55 = vadd.f32 1.0, %v2963_v49 }
 0xc0a   :  { %v829_v57 = vadd.f32 1.0, %v2965_v51 }
 0xc0b   :  { %2966 = vrcp.f32 %v828_v55 }
 0xc0c   :  { %2968 = vrcp.f32 %v829_v57 }
 0xc15   :  { %v2967_v2 = vpop.eup %2966 }
 0xc16   :  { %v2969_v58 = vpop.eup %2968  ;;  %v836_v1 = vmul.f32 %v2967_v2, %v713_v10 }
 0xc17   :  { %v847_v59 = vmul.f32 %v2969_v58, %v724_v23 }
 0xc79   :  { %v839_v63 = vpop.permute.xlu0 %838 }
 0xc7a   :  { %v841_v60 = vmul.f32 %v2967_v2, %v839_v63  ;;  %v850_v61 = vpop.permute.xlu1 %849 }
 0xc7b   :  { %v852_v8 = vmul.f32 %v2969_v58, %v850_v61 }
 0xc7c   :  { %843 = vrot.lane.b32.xlu0 %v841_v60, %s3152_s3 }
 0xc7d   :  { %854 = vrot.lane.b32.xlu1 %v852_v8, %s3152_s3 }
 0xcee   :  { %v844_v4 = vpop.permute.xlu0 %843 }
 0xcef   :  { %v846_v5 = vadd.f32 %v844_v4, %v836_v1  ;;  %v855_v6 = vpop.permute.xlu1 %854 }
 0xcf0   :  { %v857_v9 = vadd.f32 %v855_v6, %v847_v59 }
 0xcf1   :  { %2970 = vtanh.f32 %v846_v5 }
 0xcf2   :  { %2972 = vtanh.f32 %v857_v9 }
 0xcfb   :  { %v2971_v11 = vpop.eup %2970 }
 0xcfc   :  { %v2973_v14 = vpop.eup %2972  ;;  %860 = vrot.lane.b32.xlu0 %v2971_v11, %s3151_s0 }
 0xcfd   :  { %866 = vrot.lane.b32.xlu1 %v2973_v14, %s3151_s0 }
 0xd6e   :  { %v861_v15 = vpop.permute.xlu0 %860 }
 0xd6f   :  { %v863_v18 = vmul.f32 %v2967_v2, %v861_v15  ;;  %v867_v54 = vpop.permute.xlu1 %866 }
 0xd70   :  { %v869_v21 = vmul.f32 %v2969_v58, %v867_v54 }
 0xd71   :  { %871 = vrot.lane.b32.xlu0 %v863_v18, %s3152_s3 }
 0xd72   :  { %875 = vrot.lane.b32.xlu1 %v869_v21, %s3151_s0 }
 0xde3   :  { %v3504_v10 = vpop.permute.xlu0 %871 }
 0xde4   :  { %v3506_v23 = vpop.permute.xlu1 %875 }
 0xde5   :  { %v878_v24 = vsel %vm345_vm1, %v3504_v10, %v3506_v23 }
 0xde6   :  { %2572 = vmatmul.mubr.msk.f32.vlgmr.msra.gmra.mrb[6].mxu1 %vm212_vm2, %v878_v24 }
 0xde7   :  { %2733 = vmatpush1.bf16.msra.mxu1 %v3232_v12  ;;  %1212 = vmatprep.mubr.f32.mxu1 %v3150_v3 }
 0xde8   :  { %2735 = vmatprep.subr.bf16.mxu1 %v3247_v17 }
 0xdeb   :  { %2737 = vmatpush1.bf16.msra.mxu1 %v3256_v20 }
 0xdec   :  { %2739 = vmatprep.subr.bf16.mxu1 %v3263_v22 }
 0xdef   :  { %2741 = vmatpush1.bf16.msra.mxu1 %v3284_v28 }
 0xdf0   :  { %2743 = vmatprep.subr.bf16.mxu1 %v3288_v29 }
 0xdf3   :  { %2745 = vmatpush1.bf16.msra.mxu1 %v3303_v33 }
 0xeb9   :  { %v948_v25 = vpop.f32.mrb[6].mxu1 }
 0xeba   :  { %v953_v26 = vadd.f32 %v948_v25, %v3379_v7  ;;  %v950_v50 = vpop.f32.mrb[7].mxu1 }
 0xebb   :  { %v954_v12 = vadd.f32 %v950_v50, %v3369_v56 }
 0xebc   :  { %2974 = vtanh.f32 %v953_v26  ;;  %v2573_v20 = vmul.f32 -1.442695, %v953_v26 }
 0xebd   :  { %2976 = vtanh.f32 %v954_v12  ;;  %v2574_v22 = vmul.f32 -1.442695, %v954_v12 }
 0xebe   :  { %2978 = vpow2.f32 %v2573_v20 }
 0xebf   :  { %2980 = vpow2.f32 %v2574_v22 }
 0xec6   :  { %v2975_v16 = vpop.eup %2974 }
 0xec7   :  { %v2977_v17 = vpop.eup %2976  ;;  %971 = vrot.lane.b32.xlu0 %v2975_v16, %s3151_s0 }
 0xec8   :  { %982 = vrot.lane.b32.xlu1 %v2977_v17, %s3151_s0  ;;  %v2979_v28 = vpop.eup %2978 }
 0xec9   :  { %v2981_v29 = vpop.eup %2980  ;;  %v961_v33 = vadd.f32 1.0, %v2979_v28 }
 0xeca   :  { %v962_v30 = vadd.f32 1.0, %v2981_v29 }
 0xecb   :  { %2982 = vrcp.f32 %v961_v33 }
 0xecc   :  { %2984 = vrcp.f32 %v962_v30 }
 0xed5   :  { %v2983_v7 = vpop.eup %2982 }
 0xed6   :  { %v2985_v32 = vpop.eup %2984  ;;  %v969_v38 = vmul.f32 %v2983_v7, %v846_v5 }
 0xed7   :  { %v980_v43 = vmul.f32 %v2985_v32, %v857_v9 }
 0xf39   :  { %v972_v56 = vpop.permute.xlu0 %971 }
 0xf3a   :  { %v974_v34 = vmul.f32 %v2983_v7, %v972_v56  ;;  %v983_v35 = vpop.permute.xlu1 %982 }
 0xf3b   :  { %v985_v36 = vmul.f32 %v2985_v32, %v983_v35 }
 0xf3c   :  { %976 = vrot.lane.b32.xlu0 %v974_v34, %s3152_s3 }
 0xf3d   :  { %987 = vrot.lane.b32.xlu1 %v985_v36, %s3152_s3 }
 0xfae   :  { %v977_v42 = vpop.permute.xlu0 %976 }
 0xfaf   :  { %v979_v45 = vadd.f32 %v977_v42, %v969_v38  ;;  %v988_v48 = vpop.permute.xlu1 %987 }
 0xfb0   :  { %v990_v49 = vadd.f32 %v988_v48, %v980_v43 }
 0xfb1   :  { %2986 = vtanh.f32 %v979_v45 }
 0xfb2   :  { %2988 = vtanh.f32 %v990_v49 }
 0xfbb   :  { %v2987_v51 = vpop.eup %2986 }
 0xfbc   :  { %v2989_v55 = vpop.eup %2988  ;;  %993 = vrot.lane.b32.xlu0 %v2987_v51, %s3151_s0 }
 0xfbd   :  { %999 = vrot.lane.b32.xlu1 %v2989_v55, %s3151_s0 }
0x102e   :  { %v994_v57 = vpop.permute.xlu0 %993 }
0x102f   :  { %v996_v2 = vmul.f32 %v2983_v7, %v994_v57  ;;  %v1000_v63 = vpop.permute.xlu1 %999 }
0x1030   :  { %v1002_v58 = vmul.f32 %v2985_v32, %v1000_v63 }
0x1031   :  { %1004 = vrot.lane.b32.xlu0 %v996_v2, %s3152_s3 }
0x1032   :  { %1008 = vrot.lane.b32.xlu1 %v1002_v58, %s3151_s0 }
0x10a3   :  { %v3530_v60 = vpop.permute.xlu0 %1004 }
0x10a4   :  { %v3532_v61 = vpop.permute.xlu1 %1008 }
0x10a5   :  { %v1011_v8 = vsel %vm345_vm1, %v3530_v60, %v3532_v61 }
0x10a6   :  { %2575 = vmatmul.mubr.msk.f32.vlgmr.msra.gmra.mrb[20].mxu0 %vm212_vm2, %v1011_v8 }
0x10a7   :  { %1401 = vmatprep.mubr.f32.mxu0 %v3150_v3 }
0x1179   :  { %v1081_v1 = vpop.f32.mrb[20].mxu0 }
0x117a   :  { %v1086_v4 = vadd.f32 %v1081_v1, %v3383_v13  ;;  %v1083_v59 = vpop.f32.mrb[21].mxu0 }
0x117b   :  { %v1087_v5 = vadd.f32 %v1083_v59, %v3365_v52 }
0x117c   :  { %2990 = vtanh.f32 %v1086_v4  ;;  %v2576_v11 = vmul.f32 -1.442695, %v1086_v4 }
0x117d   :  { %2992 = vtanh.f32 %v1087_v5  ;;  %v2577_v14 = vmul.f32 -1.442695, %v1087_v5 }
0x117e   :  { %2994 = vpow2.f32 %v2576_v11 }
0x117f   :  { %2996 = vpow2.f32 %v2577_v14 }
0x1186   :  { %v2991_v6 = vpop.eup %2990 }
0x1187   :  { %v2993_v9 = vpop.eup %2992  ;;  %1104 = vrot.lane.b32.xlu0 %v2991_v6, %s3151_s0 }
0x1188   :  { %1115 = vrot.lane.b32.xlu1 %v2993_v9, %s3151_s0  ;;  %v2995_v15 = vpop.eup %2994 }
0x1189   :  { %v2997_v18 = vpop.eup %2996  ;;  %v1094_v54 = vadd.f32 1.0, %v2995_v15 }
0x118a   :  { %v1095_v21 = vadd.f32 1.0, %v2997_v18  ;;  %v1286_v18 = vld [vmem:[%s3944_s4 + $0x8] sm:$0xff] }
0x118b   :  { %2998 = vrcp.f32 %v1094_v54  ;;  %v1288_v54 = vld [vmem:[%s3944_s4 + $0x18] sm:$0xff] }
0x118c   :  { %3000 = vrcp.f32 %v1095_v21  ;;  %v1285_v21 = vld [vmem:[%s3944_s4] sm:$0xff] }
0x1195   :  { %v2999_v13 = vpop.eup %2998 }
0x1196   :  { %v3001_v24 = vpop.eup %3000  ;;  %v1102_v12 = vmul.f32 %v2999_v13, %v979_v45 }
0x1197   :  { %v1113_v17 = vmul.f32 %v3001_v24, %v990_v49 }
0x11f9   :  { %v1105_v52 = vpop.permute.xlu0 %1104 }
0x11fa   :  { %v1107_v25 = vmul.f32 %v2999_v13, %v1105_v52  ;;  %v1116_v26 = vpop.permute.xlu1 %1115  ;;  %v1287_v52 = vld [vmem:[%s3944_s4 + $0x10] sm:$0xff] }
0x11fb   :  { %v1118_v50 = vmul.f32 %v3001_v24, %v1116_v26  ;;  %v2748_v26 = vpack.c.bf16 %v1287_v52, %v1285_v21  ;;  %v1464_v52 = vld [vmem:[%s3945_s5 + $0x70] sm:$0xff] }
0x11fc   :  { %1109 = vrot.lane.b32.xlu0 %v1107_v25, %s3152_s3  ;;  %v1453_v25 = vld [vmem:[%s3945_s5 + $0x18] sm:$0xff] }
0x11fd   :  { %1120 = vrot.lane.b32.xlu1 %v1118_v50, %s3152_s3 }
0x126e   :  { %v1110_v16 = vpop.permute.xlu0 %1109 }
0x126f   :  { %v1112_v20 = vadd.f32 %v1110_v16, %v1102_v12  ;;  %v1121_v22 = vpop.permute.xlu1 %1120  ;;  %v1450_v12 = vld [vmem:[%s3945_s5] sm:$0xff]  ;;  %v1452_v16 = vld [vmem:[%s3945_s5 + $0x10] sm:$0xff] }
0x1270   :  { %v1123_v28 = vadd.f32 %v1121_v22, %v1113_v17  ;;  %v1290_v17 = vld [vmem:[%s3944_s4 + $0x28] sm:$0xff]  ;;  %v1292_v22 = vld [vmem:[%s3944_s4 + $0x38] sm:$0xff] }
0x1271   :  { %3002 = vtanh.f32 %v1112_v20 }
0x1272   :  { %3004 = vtanh.f32 %v1123_v28 }
0x127b   :  { %v3003_v29 = vpop.eup %3002 }
0x127c   :  { %v3005_v33 = vpop.eup %3004  ;;  %1126 = vrot.lane.b32.xlu0 %v3003_v29, %s3151_s0  ;;  %v1291_v29 = vld [vmem:[%s3944_s4 + $0x30] sm:$0xff] }
0x127d   :  { %1132 = vrot.lane.b32.xlu1 %v3005_v33, %s3151_s0  ;;  %v2750_v33 = vpack.c.bf16 %v1292_v22, %v1290_v17 }
0x12ee   :  { %v1127_v30 = vpop.permute.xlu0 %1126 }
0x12ef   :  { %v1129_v7 = vmul.f32 %v2999_v13, %v1127_v30  ;;  %v1133_v56 = vpop.permute.xlu1 %1132  ;;  %v2746_v13 = vpack.c.bf16 %v1288_v54, %v1286_v18  ;;  %v1463_v18 = vld [vmem:[%s3945_s5 + $0x68] sm:$0xff]  ;;  %v1465_v54 = vld [vmem:[%s3945_s5 + $0x78] sm:$0xff] }
0x12f0   :  { %v1135_v32 = vmul.f32 %v3001_v24, %v1133_v56  ;;  %v1451_v24 = vld [vmem:[%s3945_s5 + $0x8] sm:$0xff]  ;;  %v1457_v56 = vld [vmem:[%s3945_s5 + $0x38] sm:$0xff]  ;;  %v3683_v21 = vpack.c.bf16 %v1465_v54, %v1463_v18 }
0x12f1   :  { %1137 = vrot.lane.b32.xlu0 %v1129_v7, %s3152_s3  ;;  %v3590_v50 = vpack.c.bf16 %v1453_v25, %v1451_v24  ;;  %2747 = vmatprep.subr.bf16.mxu0 %v2746_v13  ;;  %v1455_v7 = vld [vmem:[%s3945_s5 + $0x28] sm:$0xff]  ;;  %v1462_v13 = vld [vmem:[%s3945_s5 + $0x60] sm:$0xff] }
0x12f2   :  { %1141 = vrot.lane.b32.xlu1 %v1135_v32, %s3151_s0  ;;  %2749 = vmatpush1.bf16.msra.mxu0 %v2748_v26  ;;  %v1454_v32 = vld [vmem:[%s3945_s5 + $0x20] sm:$0xff]  ;;  %v3691_v24 = vpack.c.bf16 %v1464_v52, %v1462_v13 }
0x12f3   :  { %2763 = vmatprep.subr.bf16.mxu1 %v3590_v50  ;;  %2751 = vmatprep.subr.bf16.mxu0 %v2750_v33 }
0x1363   :  { %v3549_v34 = vpop.permute.xlu0 %1137 }
0x1364   :  { %v3551_v35 = vpop.permute.xlu1 %1141 }
0x1365   :  { %v1144_v36 = vsel %vm345_vm1, %v3549_v34, %v3551_v35 }
0x1366   :  { %2578 = vmatmul.mubr.msk.f32.vlgmr.msra.gmra.mrb[8].mxu1 %vm212_vm2, %v1144_v36  ;;  %v3623_v36 = vpack.c.bf16 %v1457_v56, %v1455_v7 }
0x1367   :  { %1530 = vmatprep.mubr.f32.mxu1 %v3150_v3 }
0x1439   :  { %v1214_v38 = vpop.f32.mrb[8].mxu1 }
0x143a   :  { %v1219_v42 = vadd.f32 %v1214_v38, %v3388_v19  ;;  %v1216_v43 = vpop.f32.mrb[9].mxu1  ;;  %v1456_v38 = vld [vmem:[%s3945_s5 + $0x30] sm:$0xff] }
0x143b   :  { %v1220_v45 = vadd.f32 %v1216_v43, %v3359_v47  ;;  %v1296_v43 = vld [vmem:[%s3944_s4 + $0x58] sm:$0xff] }
0x143c   :  { %3006 = vtanh.f32 %v1219_v42  ;;  %v2579_v51 = vmul.f32 -1.442695, %v1219_v42  ;;  %v1294_v42 = vld [vmem:[%s3944_s4 + $0x48] sm:$0xff] }
0x143d   :  { %3008 = vtanh.f32 %v1220_v45  ;;  %v2580_v55 = vmul.f32 -1.442695, %v1220_v45  ;;  %v3634_v45 = vpack.c.bf16 %v1456_v38, %v1454_v32 }
0x143e   :  { %3010 = vpow2.f32 %v2579_v51  ;;  %v1295_v51 = vld [vmem:[%s3944_s4 + $0x50] sm:$0xff] }
0x143f   :  { %3012 = vpow2.f32 %v2580_v55  ;;  %v1459_v55 = vld [vmem:[%s3945_s5 + $0x48] sm:$0xff] }
0x1446   :  { %v3007_v48 = vpop.eup %3006 }
0x1447   :  { %v3009_v49 = vpop.eup %3008  ;;  %1237 = vrot.lane.b32.xlu1 %v3007_v48, %s3151_s0  ;;  %v2754_v48 = vpack.c.bf16 %v1296_v43, %v1294_v42 }
0x1448   :  { %1248 = vrot.lane.b32.xlu0 %v3009_v49, %s3151_s0  ;;  %v3011_v57 = vpop.eup %3010  ;;  %v1293_v49 = vld [vmem:[%s3944_s4 + $0x40] sm:$0xff] }
0x1449   :  { %v3013_v2 = vpop.eup %3012  ;;  %v1227_v63 = vadd.f32 1.0, %v3011_v57  ;;  %v1461_v57 = vld [vmem:[%s3945_s5 + $0x58] sm:$0xff] }
0x144a   :  { %v1228_v58 = vadd.f32 1.0, %v3013_v2  ;;  %v1458_v2 = vld [vmem:[%s3945_s5 + $0x40] sm:$0xff] }
0x144b   :  { %3014 = vrcp.f32 %v1227_v63  ;;  %v1460_v63 = vld [vmem:[%s3945_s5 + $0x50] sm:$0xff] }
0x144c   :  { %3016 = vrcp.f32 %v1228_v58 }
0x1455   :  { %v3562_v19 = vpop.eup %3014 }
0x1456   :  { %v3564_v8 = vpop.eup %3016  ;;  %v1235_v5 = vmul.f32 %v3562_v19, %v1112_v20  ;;  %v3601_v20 = vpack.c.bf16 %v1452_v16, %v1450_v12 }
0x1457   :  { %v1246_v9 = vmul.f32 %v3564_v8, %v1123_v28  ;;  %v1289_v28 = vld [vmem:[%s3944_s4 + $0x20] sm:$0xff] }
0x1458   :  { %v2752_v30 = vpack.c.bf16 %v1291_v29, %v1289_v28  ;;  %2765 = vmatpush1.bf16.msra.mxu1 %v3601_v20 }
0x1459   :  { %2767 = vmatprep.subr.bf16.mxu1 %v3623_v36 }
0x145a   :  { %2753 = vmatpush1.bf16.msra.mxu0 %v2752_v30 }
0x145b   :  { %2755 = vmatprep.subr.bf16.mxu0 %v2754_v48 }
0x145c   :  { %2769 = vmatpush1.bf16.msra.mxu1 %v3634_v45 }
0x14b9   :  { %v1238_v47 = vpop.permute.xlu1 %1237 }
0x14ba   :  { %v1240_v1 = vmul.f32 %v3562_v19, %v1238_v47  ;;  %v1249_v4 = vpop.permute.xlu0 %1248  ;;  %v2756_v47 = vpack.c.bf16 %v1295_v51, %v1293_v49 }
0x14bb   :  { %v1251_v59 = vmul.f32 %v3564_v8, %v1249_v4  ;;  %v1298_v4 = vld [vmem:[%s3944_s4 + $0x68] sm:$0xff] }
0x14bc   :  { %1242 = vrot.lane.b32.xlu1 %v1240_v1, %s3152_s3  ;;  %v3655_v1 = vpack.c.bf16 %v1461_v57, %v1459_v55  ;;  %2757 = vmatpush1.bf16.msra.mxu0 %v2756_v47 }
0x14bd   :  { %1253 = vrot.lane.b32.xlu0 %v1251_v59, %s3152_s3  ;;  %v1300_v59 = vld [vmem:[%s3944_s4 + $0x78] sm:$0xff] }
0x14be   :  { %2771 = vmatprep.subr.bf16.mxu1 %v3655_v1 }
0x152e   :  { %v1243_v6 = vpop.permute.xlu1 %1242 }
0x152f   :  { %v1245_v11 = vadd.f32 %v1243_v6, %v1235_v5  ;;  %v1254_v14 = vpop.permute.xlu0 %1253  ;;  %v3665_v6 = vpack.c.bf16 %v1460_v63, %v1458_v2 }
0x1530   :  { %v1256_v15 = vadd.f32 %v1254_v14, %v1246_v9  ;;  %v2758_v9 = vpack.c.bf16 %v1300_v59, %v1298_v4  ;;  %v1299_v14 = vld [vmem:[%s3944_s4 + $0x70] sm:$0xff] }
0x1531   :  { %3018 = vtanh.f32 %v1245_v11  ;;  %v1297_v11 = vld [vmem:[%s3944_s4 + $0x60] sm:$0xff]  ;;  %2773 = vmatpush1.bf16.msra.mxu1 %v3665_v6 }
0x1532   :  { %3020 = vtanh.f32 %v1256_v15  ;;  %v2760_v15 = vpack.c.bf16 %v1299_v14, %v1297_v11  ;;  %2759 = vmatprep.subr.bf16.mxu0 %v2758_v9  ;;  %2775 = vmatprep.subr.bf16.mxu1 %v3683_v21 }
0x1534   :  { %2761 = vmatpush1.bf16.msra.mxu0 %v2760_v15 }
0x1535   :  { %2795 = vmatprep.subr.bf16.mxu0 %v3590_v50  ;;  %2777 = vmatpush1.bf16.msra.mxu1 %v3691_v24 }
0x1536   :  { %2779 = vmatprep.subr.bf16.mxu1 %v3590_v50 }
0x1538   :  { %1531 = vmatmul.mubr.f32.vlgmr.msra.gmra.mrb[10].mxu1 %v3150_v3 }
0x1539   :  { %2781 = vmatpush1.bf16.msra.mxu1 %v3601_v20  ;;  %1663 = vmatprep.mubr.f32.mxu1 %v3150_v3 }
0x153a   :  { %2783 = vmatprep.subr.bf16.mxu1 %v3623_v36 }
0x153b   :  { %v3019_v58 = vpop.eup %3018 }
0x153c   :  { %v3021_v5 = vpop.eup %3020  ;;  %1259 = vrot.lane.b32.xlu1 %v3019_v58, %s3151_s0 }
0x153d   :  { %1265 = vrot.lane.b32.xlu0 %v3021_v5, %s3151_s0  ;;  %2785 = vmatpush1.bf16.msra.mxu1 %v3634_v45 }
0x153e   :  { %2787 = vmatprep.subr.bf16.mxu1 %v3655_v1 }
0x1541   :  { %2789 = vmatpush1.bf16.msra.mxu1 %v3665_v6 }
0x1542   :  { %2791 = vmatprep.subr.bf16.mxu1 %v3683_v21 }
0x1545   :  { %2793 = vmatpush1.bf16.msra.mxu1 %v3691_v24 }
0x1546   :  { %2811 = vmatprep.subr.bf16.mxu1 %v3590_v50 }
0x15ae   :  { %v1260_v25 = vpop.permute.xlu1 %1259 }
0x15af   :  { %v1262_v26 = vmul.f32 %v3562_v19, %v1260_v25  ;;  %v1266_v12 = vpop.permute.xlu0 %1265 }
0x15b0   :  { %v1268_v16 = vmul.f32 %v3564_v8, %v1266_v12  ;;  %v1274_v8 = vsel %vm345_vm1, %v3424_v46, %v3551_v35  ;;  %v1276_v46 = vsel %vm345_vm1, %v3478_v27, %v3506_v23  ;;  %v1278_v27 = vsel %vm345_vm1, %v3530_v60, %v3453_v39 }
0x15b1   :  { %1281 = vrot.lane.b32.xlu1 %v1262_v26, %s3152_s3  ;;  %v1279_v23 = vsel %vm345_vm1, %v3549_v34, %v3426_v53  ;;  %v1301_v53 = vld [vmem:[%s3946_s6] sm:$0x3] }
0x15b2   :  { %1270 = vrot.lane.b32.xlu0 %v1268_v16, %s3151_s0  ;;  %v1306_v60 = vrot.slane %v1301_v53, %v50_v44  ;;  %v1310_v34 = vrot.slane %v1301_v53, %v54_v41 }
0x160b   :  { %v1532_v39 = vpop.f32.mrb[10].mxu1 }
0x1624   :  { %v3710_v17 = vpop.permute.xlu0 %1270 }
0x1625   :  { %v1273_v19 = vsel %vm345_vm1, %v3397_v62, %v3710_v17  ;;  %v1275_v62 = vsel %vm345_vm1, %v3451_v37, %v3532_v61  ;;  %v1277_v37 = vsel %vm345_vm1, %v3504_v10, %v3480_v31  ;;  %v3753_v61 = vpop.permute.xlu1 %1281  ;;  %v1534_v10 = vpop.f32.mrb[11].mxu1 }
0x1626   :  { %2581 = vmatmul.mubr.msk.f32.vlgmr.msra.gmra.mrb[22].mxu0 %vm212_vm2, %v1273_v19  ;;  %v1284_v31 = vsel %vm345_vm1, %v3753_v61, %v3399_v0 }
0x1627   :  { %1407 = vmatprep.mubr.f32.mxu0 %v3150_v3  ;;  %2797 = vmatpush1.bf16.msra.mxu0 %v3601_v20 }
0x1628   :  { %2799 = vmatprep.subr.bf16.mxu0 %v3623_v36 }
0x162a   :  { %2582 = vmatmul.mubr.msk.f32.gmra.mrb[24].mxu0 %vm212_vm2, %v1274_v8 }
0x162b   :  { %1413 = vmatprep.mubr.f32.mxu0 %v3150_v3  ;;  %2801 = vmatpush1.bf16.msra.mxu0 %v3634_v45 }
0x162c   :  { %2803 = vmatprep.subr.bf16.mxu0 %v3655_v1 }
0x162e   :  { %2583 = vmatmul.mubr.msk.f32.gmra.mrb[26].mxu0 %vm212_vm2, %v1275_v62 }
0x162f   :  { %1419 = vmatprep.mubr.f32.mxu0 %v3150_v3  ;;  %2805 = vmatpush1.bf16.msra.mxu0 %v3665_v6 }
0x1630   :  { %2807 = vmatprep.subr.bf16.mxu0 %v3683_v21 }
0x1632   :  { %2584 = vmatmul.mubr.msk.f32.gmra.mrb[28].mxu0 %vm212_vm2, %v1276_v46 }
0x1633   :  { %1425 = vmatprep.mubr.f32.mxu0 %v3150_v3  ;;  %2809 = vmatpush1.bf16.msra.mxu0 %v3691_v24 }
0x1634   :  { %2827 = vmatprep.subr.bf16.mxu0 %v3590_v50 }
0x1636   :  { %2585 = vmatmul.mubr.msk.f32.gmra.mrb[30].mxu0 %vm212_vm2, %v1277_v37 }
0x1637   :  { %1431 = vmatprep.mubr.f32.mxu0 %v3150_v3 }
0x163a   :  { %2586 = vmatmul.mubr.msk.f32.gmra.mrb[32].mxu0 %vm212_vm2, %v1278_v27 }
0x163b   :  { %1437 = vmatprep.mubr.f32.mxu0 %v3150_v3 }
0x163e   :  { %2587 = vmatmul.mubr.msk.f32.gmra.mrb[34].mxu0 %vm212_vm2, %v1279_v23 }
0x163f   :  { %1443 = vmatprep.mubr.f32.mxu0 %v3150_v3 }
0x1642   :  { %2588 = vmatmul.mubr.msk.f32.gmra.mrb[36].mxu0 %vm212_vm2, %v1284_v31 }
0x1643   :  { %1796 = vmatprep.mubr.f32.mxu0 %v3150_v3 }
0x16f9   :  { %v1403_v35 = vpop.f32.mrb[22].mxu0 }
0x16fa   :  { %v1404_v22 = vadd.f32 %v1403_v35, %v1306_v60  ;;  %v1405_v28 = vpop.f32.mrb[23].mxu0 }
0x16fb   :  { %v3769_v0 = vadd.f32 %v1405_v28, %v1310_v34 }
0x16fc   :  { %v1537_v29 = vadd.f32 %v1532_v39, %v1404_v22 }
0x16fd   :  { %v1409_v33 = vpop.f32.mrb[24].mxu0 }
0x16fe   :  { %3022 = vtanh.f32 %v1537_v29  ;;  %v3771_v30 = vadd.f32 %v1409_v33, %v1306_v60  ;;  %v1411_v7 = vpop.f32.mrb[25].mxu0  ;;  %v2589_v25 = vmul.f32 -1.442695, %v1537_v29 }
0x16ff   :  { %v3773_v56 = vadd.f32 %v1411_v7, %v1310_v34 }
0x1701   :  { %v1415_v32 = vpop.f32.mrb[26].mxu0 }
0x1702   :  { %v3775_v38 = vadd.f32 %v1415_v32, %v1306_v60  ;;  %v1417_v44 = vpop.f32.mrb[27].mxu0 }
0x1703   :  { %v3777_v42 = vadd.f32 %v1417_v44, %v1310_v34 }
0x1705   :  { %v1421_v40 = vpop.f32.mrb[28].mxu0 }
0x1706   :  { %v3779_v41 = vadd.f32 %v1421_v40, %v1306_v60  ;;  %v1423_v43 = vpop.f32.mrb[29].mxu0 }
0x1707   :  { %v3781_v48 = vadd.f32 %v1423_v43, %v1310_v34 }
0x1708   :  { %v3023_v49 = vpop.eup %3022 }
0x1709   :  { %v1427_v51 = vpop.f32.mrb[30].mxu0  ;;  %1555 = vrot.lane.b32.xlu0 %v3023_v49, %s3151_s0 }
0x170a   :  { %v3784_v55 = vadd.f32 %v1427_v51, %v1306_v60  ;;  %v1429_v57 = vpop.f32.mrb[31].mxu0 }
0x170b   :  { %v3786_v2 = vadd.f32 %v1429_v57, %v1310_v34 }
0x170d   :  { %v1433_v63 = vpop.f32.mrb[32].mxu0 }
0x170e   :  { %v3788_v58 = vadd.f32 %v1433_v63, %v1306_v60  ;;  %v1435_v47 = vpop.f32.mrb[33].mxu0 }
0x170f   :  { %v3790_v4 = vadd.f32 %v1435_v47, %v1310_v34 }
0x1711   :  { %v1439_v59 = vpop.f32.mrb[34].mxu0 }
0x1712   :  { %v3792_v5 = vadd.f32 %v1439_v59, %v1306_v60  ;;  %v1441_v9 = vpop.f32.mrb[35].mxu0 }
0x1713   :  { %v1442_v11 = vadd.f32 %v1441_v9, %v1310_v34 }
0x1715   :  { %v1445_v14 = vpop.f32.mrb[36].mxu0 }
0x1716   :  { %v3794_v15 = vadd.f32 %v1445_v14, %v1306_v60  ;;  %v1447_v18 = vpop.f32.mrb[37].mxu0 }
0x1717   :  { %v1448_v54 = vadd.f32 %v1447_v18, %v1310_v34 }
0x1719   :  { %v1538_v13 = vadd.f32 %v1534_v10, %v1448_v54 }
0x171b   :  { %3024 = vtanh.f32 %v1538_v13  ;;  %v2590_v16 = vmul.f32 -1.442695, %v1538_v13 }
0x171c   :  { %3026 = vpow2.f32 %v2589_v25 }
0x1725   :  { %v3025_v52 = vpop.eup %3024 }
0x1726   :  { %1566 = vrot.lane.b32.xlu1 %v3025_v52, %s3151_s0  ;;  %v3027_v26 = vpop.eup %3026 }
0x1727   :  { %v1545_v12 = vadd.f32 1.0, %v3027_v26 }
0x1729   :  { %3028 = vrcp.f32 %v1545_v12 }
0x172a   :  { %3030 = vpow2.f32 %v2590_v16 }
0x1733   :  { %v3029_v19 = vpop.eup %3028 }
0x1734   :  { %v3031_v46 = vpop.eup %3030  ;;  %v1553_v39 = vmul.f32 0.0, %v3029_v19 }
0x1735   :  { %v1546_v37 = vadd.f32 1.0, %v3031_v46 }
0x1737   :  { %3032 = vrcp.f32 %v1546_v37 }
0x1741   :  { %v3033_v27 = vpop.eup %3032 }
0x1742   :  { %v1564_v34 = vmul.f32 0.0, %v3033_v27 }
0x177b   :  { %v1556_v8 = vpop.permute.xlu0 %1555 }
0x177c   :  { %v1558_v62 = vmul.f32 %v3029_v19, %v1556_v8 }
0x177e   :  { %1560 = vrot.lane.b32.xlu0 %v1558_v62, %s3152_s3 }
0x1798   :  { %v1567_v23 = vpop.permute.xlu1 %1566 }
0x1799   :  { %v1569_v31 = vmul.f32 %v3033_v27, %v1567_v23 }
0x179b   :  { %1571 = vrot.lane.b32.xlu1 %v1569_v31, %s3152_s3 }
0x17f0   :  { %v1561_v10 = vpop.permute.xlu0 %1560 }
0x17f1   :  { %v1563_v53 = vadd.f32 %v1561_v10, %v1553_v39 }
0x17f3   :  { %3034 = vtanh.f32 %v1563_v53 }
0x17fd   :  { %v3035_v60 = vpop.eup %3034 }
0x17fe   :  { %1577 = vrot.lane.b32.xlu0 %v3035_v60, %s3151_s0 }
0x180d   :  { %v1572_v35 = vpop.permute.xlu1 %1571 }
0x180e   :  { %v1574_v22 = vadd.f32 %v1572_v35, %v1564_v34 }
0x1810   :  { %3036 = vtanh.f32 %v1574_v22 }
0x181a   :  { %v3037_v28 = vpop.eup %3036 }
0x181b   :  { %1583 = vrot.lane.b32.xlu1 %v3037_v28, %s3151_s0 }
0x1870   :  { %v1578_v29 = vpop.permute.xlu0 %1577 }
0x1871   :  { %v1580_v33 = vmul.f32 %v3029_v19, %v1578_v29 }
0x1873   :  { %1588 = vrot.lane.b32.xlu0 %v1580_v33, %s3152_s3 }
0x188d   :  { %v1584_v7 = vpop.permute.xlu1 %1583 }
0x188e   :  { %v1586_v32 = vmul.f32 %v3033_v27, %v1584_v7 }
0x1890   :  { %1592 = vrot.lane.b32.xlu1 %v1586_v32, %s3151_s0 }
0x18e5   :  { %v1589_v44 = vpop.permute.xlu0 %1588 }
0x1902   :  { %v1593_v40 = vpop.permute.xlu1 %1592 }
0x1903   :  { %v1595_v43 = vsel %vm345_vm1, %v1589_v44, %v1593_v40 }
0x1904   :  { %2591 = vmatmul.mubr.msk.f32.vlgmr.msra.gmra.mrb[12].mxu1 %vm212_vm2, %v1595_v43 }
0x1905   :  { %2813 = vmatpush1.bf16.msra.mxu1 %v3601_v20  ;;  %1929 = vmatprep.mubr.f32.mxu1 %v3150_v3 }
0x1906   :  { %2815 = vmatprep.subr.bf16.mxu1 %v3623_v36 }
0x1909   :  { %2817 = vmatpush1.bf16.msra.mxu1 %v3634_v45 }
0x190a   :  { %2819 = vmatprep.subr.bf16.mxu1 %v3655_v1 }
0x190d   :  { %2821 = vmatpush1.bf16.msra.mxu1 %v3665_v6 }
0x190e   :  { %2823 = vmatprep.subr.bf16.mxu1 %v3683_v21 }
0x1911   :  { %2825 = vmatpush1.bf16.msra.mxu1 %v3691_v24 }
0x1912   :  { %2843 = vmatprep.subr.bf16.mxu1 %v3590_v50 }
0x19d7   :  { %v1665_v49 = vpop.f32.mrb[12].mxu1 }
0x19d8   :  { %v1670_v51 = vadd.f32 %v1665_v49, %v3771_v30  ;;  %v1667_v57 = vpop.f32.mrb[13].mxu1 }
0x19d9   :  { %v1671_v63 = vadd.f32 %v1667_v57, %v1442_v11 }
0x19da   :  { %3038 = vtanh.f32 %v1670_v51  ;;  %v2592_v9 = vmul.f32 -1.442695, %v1670_v51 }
0x19db   :  { %3040 = vtanh.f32 %v1671_v63  ;;  %v2593_v14 = vmul.f32 -1.442695, %v1671_v63 }
0x19dc   :  { %3042 = vpow2.f32 %v2592_v9 }
0x19dd   :  { %3044 = vpow2.f32 %v2593_v14 }
0x19e4   :  { %v3039_v47 = vpop.eup %3038 }
0x19e5   :  { %v3041_v59 = vpop.eup %3040  ;;  %1688 = vrot.lane.b32.xlu0 %v3039_v47, %s3151_s0 }
0x19e6   :  { %1699 = vrot.lane.b32.xlu1 %v3041_v59, %s3151_s0  ;;  %v3043_v18 = vpop.eup %3042 }
0x19e7   :  { %v3045_v54 = vpop.eup %3044  ;;  %v1678_v13 = vadd.f32 1.0, %v3043_v18 }
0x19e8   :  { %v1679_v52 = vadd.f32 1.0, %v3045_v54 }
0x19e9   :  { %3046 = vrcp.f32 %v1678_v13 }
0x19ea   :  { %3048 = vrcp.f32 %v1679_v52 }
0x19f3   :  { %v3047_v30 = vpop.eup %3046 }
0x19f4   :  { %v3049_v25 = vpop.eup %3048  ;;  %v1686_v19 = vmul.f32 %v3047_v30, %v1563_v53 }
0x19f5   :  { %v1697_v62 = vmul.f32 %v3049_v25, %v1574_v22 }
0x1a57   :  { %v1689_v11 = vpop.permute.xlu0 %1688 }
0x1a58   :  { %v1691_v26 = vmul.f32 %v3047_v30, %v1689_v11  ;;  %v1700_v12 = vpop.permute.xlu1 %1699 }
0x1a59   :  { %v1702_v16 = vmul.f32 %v3049_v25, %v1700_v12 }
0x1a5a   :  { %1693 = vrot.lane.b32.xlu0 %v1691_v26, %s3152_s3 }
0x1a5b   :  { %1704 = vrot.lane.b32.xlu1 %v1702_v16, %s3152_s3 }
0x1acc   :  { %v1694_v8 = vpop.permute.xlu0 %1693 }
0x1acd   :  { %v1696_v46 = vadd.f32 %v1694_v8, %v1686_v19  ;;  %v1705_v37 = vpop.permute.xlu1 %1704 }
0x1ace   :  { %v1707_v27 = vadd.f32 %v1705_v37, %v1697_v62 }
0x1acf   :  { %3050 = vtanh.f32 %v1696_v46 }
0x1ad0   :  { %3052 = vtanh.f32 %v1707_v27 }
0x1ad9   :  { %v3051_v23 = vpop.eup %3050 }
0x1ada   :  { %v3053_v31 = vpop.eup %3052  ;;  %1710 = vrot.lane.b32.xlu0 %v3051_v23, %s3151_s0 }
0x1adb   :  { %1716 = vrot.lane.b32.xlu1 %v3053_v31, %s3151_s0 }
0x1b4c   :  { %v1711_v39 = vpop.permute.xlu0 %1710 }
0x1b4d   :  { %v1713_v10 = vmul.f32 %v3047_v30, %v1711_v39  ;;  %v1717_v60 = vpop.permute.xlu1 %1716 }
0x1b4e   :  { %v1719_v34 = vmul.f32 %v3049_v25, %v1717_v60 }
0x1b4f   :  { %1721 = vrot.lane.b32.xlu0 %v1713_v10, %s3152_s3 }
0x1b50   :  { %1725 = vrot.lane.b32.xlu1 %v1719_v34, %s3151_s0 }
0x1bc1   :  { %v1722_v53 = vpop.permute.xlu0 %1721 }
0x1bc2   :  { %v1726_v35 = vpop.permute.xlu1 %1725 }
0x1bc3   :  { %v1728_v22 = vsel %vm345_vm1, %v1722_v53, %v1726_v35 }
0x1bc4   :  { %2594 = vmatmul.mubr.msk.f32.vlgmr.msra.gmra.mrb[38].mxu0 %vm212_vm2, %v1728_v22 }
0x1bc5   :  { %2829 = vmatpush1.bf16.msra.mxu0 %v3601_v20  ;;  %2062 = vmatprep.mubr.f32.mxu0 %v3150_v3 }
0x1bc6   :  { %2831 = vmatprep.subr.bf16.mxu0 %v3623_v36 }
0x1bc9   :  { %2833 = vmatpush1.bf16.msra.mxu0 %v3634_v45 }
0x1bca   :  { %2835 = vmatprep.subr.bf16.mxu0 %v3655_v1 }
0x1bcd   :  { %2837 = vmatpush1.bf16.msra.mxu0 %v3665_v6 }
0x1bce   :  { %2839 = vmatprep.subr.bf16.mxu0 %v3683_v21 }
0x1bd1   :  { %2841 = vmatpush1.bf16.msra.mxu0 %v3691_v24 }
0x1bd2   :  { %2859 = vmatprep.subr.bf16.mxu0 %v3590_v50 }
0x1c97   :  { %v1798_v28 = vpop.f32.mrb[38].mxu0 }
0x1c98   :  { %v1803_v29 = vadd.f32 %v1798_v28, %v3775_v38  ;;  %v1800_v33 = vpop.f32.mrb[39].mxu0 }
0x1c99   :  { %v1804_v7 = vadd.f32 %v1800_v33, %v3790_v4 }
0x1c9a   :  { %3054 = vtanh.f32 %v1803_v29  ;;  %v2595_v40 = vmul.f32 -1.442695, %v1803_v29 }
0x1c9b   :  { %3056 = vtanh.f32 %v1804_v7  ;;  %v2596_v43 = vmul.f32 -1.442695, %v1804_v7 }
0x1c9c   :  { %3058 = vpow2.f32 %v2595_v40 }
0x1c9d   :  { %3060 = vpow2.f32 %v2596_v43 }
0x1ca4   :  { %v3055_v32 = vpop.eup %3054 }
0x1ca5   :  { %v3057_v44 = vpop.eup %3056  ;;  %1821 = vrot.lane.b32.xlu0 %v3055_v32, %s3151_s0 }
0x1ca6   :  { %1832 = vrot.lane.b32.xlu1 %v3057_v44, %s3151_s0  ;;  %v3059_v49 = vpop.eup %3058 }
0x1ca7   :  { %v3061_v51 = vpop.eup %3060  ;;  %v1811_v57 = vadd.f32 1.0, %v3059_v49 }
0x1ca8   :  { %v1812_v63 = vadd.f32 1.0, %v3061_v51 }
0x1ca9   :  { %3062 = vrcp.f32 %v1811_v57 }
0x1caa   :  { %3064 = vrcp.f32 %v1812_v63 }
0x1cb3   :  { %v3063_v38 = vpop.eup %3062 }
0x1cb4   :  { %v3065_v47 = vpop.eup %3064  ;;  %v1819_v18 = vmul.f32 %v3063_v38, %v1696_v46 }
0x1cb5   :  { %v1830_v13 = vmul.f32 %v3065_v47, %v1707_v27 }
0x1d17   :  { %v1822_v4 = vpop.permute.xlu0 %1821 }
0x1d18   :  { %v1824_v59 = vmul.f32 %v3063_v38, %v1822_v4  ;;  %v1833_v9 = vpop.permute.xlu1 %1832 }
0x1d19   :  { %v1835_v14 = vmul.f32 %v3065_v47, %v1833_v9 }
0x1d1a   :  { %1826 = vrot.lane.b32.xlu0 %v1824_v59, %s3152_s3 }
0x1d1b   :  { %1837 = vrot.lane.b32.xlu1 %v1835_v14, %s3152_s3 }
0x1d8c   :  { %v1827_v54 = vpop.permute.xlu0 %1826 }
0x1d8d   :  { %v1829_v52 = vadd.f32 %v1827_v54, %v1819_v18  ;;  %v1838_v30 = vpop.permute.xlu1 %1837 }
0x1d8e   :  { %v1840_v11 = vadd.f32 %v1838_v30, %v1830_v13 }
0x1d8f   :  { %3066 = vtanh.f32 %v1829_v52 }
0x1d90   :  { %3068 = vtanh.f32 %v1840_v11 }
0x1d99   :  { %v3067_v25 = vpop.eup %3066 }
0x1d9a   :  { %v3069_v26 = vpop.eup %3068  ;;  %1843 = vrot.lane.b32.xlu0 %v3067_v25, %s3151_s0 }
0x1d9b   :  { %1849 = vrot.lane.b32.xlu1 %v3069_v26, %s3151_s0 }
0x1e0c   :  { %v1844_v12 = vpop.permute.xlu0 %1843 }
0x1e0d   :  { %v1846_v16 = vmul.f32 %v3063_v38, %v1844_v12  ;;  %v1850_v19 = vpop.permute.xlu1 %1849 }
0x1e0e   :  { %v1852_v8 = vmul.f32 %v3065_v47, %v1850_v19 }
0x1e0f   :  { %1854 = vrot.lane.b32.xlu0 %v1846_v16, %s3152_s3 }
0x1e10   :  { %1858 = vrot.lane.b32.xlu1 %v1852_v8, %s3151_s0 }
0x1e81   :  { %v1855_v62 = vpop.permute.xlu0 %1854 }
0x1e82   :  { %v1859_v46 = vpop.permute.xlu1 %1858 }
0x1e83   :  { %v1861_v37 = vsel %vm345_vm1, %v1855_v62, %v1859_v46 }
0x1e84   :  { %2597 = vmatmul.mubr.msk.f32.vlgmr.msra.gmra.mrb[14].mxu1 %vm212_vm2, %v1861_v37 }
0x1e85   :  { %2845 = vmatpush1.bf16.msra.mxu1 %v3601_v20  ;;  %2195 = vmatprep.mubr.f32.mxu1 %v3150_v3 }
0x1e86   :  { %2847 = vmatprep.subr.bf16.mxu1 %v3623_v36 }
0x1e89   :  { %2849 = vmatpush1.bf16.msra.mxu1 %v3634_v45 }
0x1e8a   :  { %2851 = vmatprep.subr.bf16.mxu1 %v3655_v1 }
0x1e8d   :  { %2853 = vmatpush1.bf16.msra.mxu1 %v3665_v6 }
0x1e8e   :  { %2855 = vmatprep.subr.bf16.mxu1 %v3683_v21 }
0x1e91   :  { %2857 = vmatpush1.bf16.msra.mxu1 %v3691_v24 }
0x1e92   :  { %2875 = vmatprep.subr.bf16.mxu1 %v3590_v50 }
0x1f57   :  { %v1931_v27 = vpop.f32.mrb[14].mxu1 }
0x1f58   :  { %v1936_v23 = vadd.f32 %v1931_v27, %v3779_v41  ;;  %v1933_v31 = vpop.f32.mrb[15].mxu1 }
0x1f59   :  { %v1937_v39 = vadd.f32 %v1933_v31, %v3786_v2 }
0x1f5a   :  { %3070 = vtanh.f32 %v1936_v23  ;;  %v2598_v34 = vmul.f32 -1.442695, %v1936_v23 }
0x1f5b   :  { %3072 = vtanh.f32 %v1937_v39  ;;  %v2599_v53 = vmul.f32 -1.442695, %v1937_v39 }
0x1f5c   :  { %3074 = vpow2.f32 %v2598_v34 }
0x1f5d   :  { %3076 = vpow2.f32 %v2599_v53 }
0x1f64   :  { %v3071_v10 = vpop.eup %3070 }
0x1f65   :  { %v3073_v60 = vpop.eup %3072  ;;  %1954 = vrot.lane.b32.xlu0 %v3071_v10, %s3151_s0 }
0x1f66   :  { %1965 = vrot.lane.b32.xlu1 %v3073_v60, %s3151_s0  ;;  %v3075_v35 = vpop.eup %3074 }
0x1f67   :  { %v3077_v50 = vpop.eup %3076  ;;  %v1944_v22 = vadd.f32 1.0, %v3075_v35 }
0x1f68   :  { %v1945_v28 = vadd.f32 1.0, %v3077_v50 }
0x1f69   :  { %3078 = vrcp.f32 %v1944_v22 }
0x1f6a   :  { %3080 = vrcp.f32 %v1945_v28 }
0x1f73   :  { %v3079_v41 = vpop.eup %3078 }
0x1f74   :  { %v3081_v29 = vpop.eup %3080  ;;  %v1952_v44 = vmul.f32 %v3079_v41, %v1829_v52 }
0x1f75   :  { %v1963_v43 = vmul.f32 %v3081_v29, %v1840_v11 }
0x1fd7   :  { %v1955_v2 = vpop.permute.xlu0 %1954 }
0x1fd8   :  { %v1957_v33 = vmul.f32 %v3079_v41, %v1955_v2  ;;  %v1966_v7 = vpop.permute.xlu1 %1965 }
0x1fd9   :  { %v1968_v32 = vmul.f32 %v3081_v29, %v1966_v7 }
0x1fda   :  { %1959 = vrot.lane.b32.xlu0 %v1957_v33, %s3152_s3 }
0x1fdb   :  { %1970 = vrot.lane.b32.xlu1 %v1968_v32, %s3152_s3 }
0x204c   :  { %v1960_v40 = vpop.permute.xlu0 %1959 }
0x204d   :  { %v1962_v49 = vadd.f32 %v1960_v40, %v1952_v44  ;;  %v1971_v51 = vpop.permute.xlu1 %1970 }
0x204e   :  { %v1973_v57 = vadd.f32 %v1971_v51, %v1963_v43 }
0x204f   :  { %3082 = vtanh.f32 %v1962_v49 }
0x2050   :  { %3084 = vtanh.f32 %v1973_v57 }
0x2059   :  { %v3083_v63 = vpop.eup %3082 }
0x205a   :  { %v3085_v38 = vpop.eup %3084  ;;  %1976 = vrot.lane.b32.xlu0 %v3083_v63, %s3151_s0 }
0x205b   :  { %1982 = vrot.lane.b32.xlu1 %v3085_v38, %s3151_s0 }
0x20cc   :  { %v1977_v4 = vpop.permute.xlu0 %1976 }
0x20cd   :  { %v1979_v47 = vmul.f32 %v3079_v41, %v1977_v4  ;;  %v1983_v59 = vpop.permute.xlu1 %1982 }
0x20ce   :  { %v1985_v9 = vmul.f32 %v3081_v29, %v1983_v59 }
0x20cf   :  { %1987 = vrot.lane.b32.xlu0 %v1979_v47, %s3152_s3 }
0x20d0   :  { %1991 = vrot.lane.b32.xlu1 %v1985_v9, %s3151_s0 }
0x2141   :  { %v1988_v14 = vpop.permute.xlu0 %1987 }
0x2142   :  { %v1992_v18 = vpop.permute.xlu1 %1991 }
0x2143   :  { %v1994_v54 = vsel %vm345_vm1, %v1988_v14, %v1992_v18 }
0x2144   :  { %2600 = vmatmul.mubr.msk.f32.vlgmr.msra.gmra.mrb[40].mxu0 %vm212_vm2, %v1994_v54 }
0x2145   :  { %2861 = vmatpush1.bf16.msra.mxu0 %v3601_v20  ;;  %2328 = vmatprep.mubr.f32.mxu0 %v3150_v3 }
0x2146   :  { %2863 = vmatprep.subr.bf16.mxu0 %v3623_v36 }
0x2149   :  { %2865 = vmatpush1.bf16.msra.mxu0 %v3634_v45 }
0x214a   :  { %2867 = vmatprep.subr.bf16.mxu0 %v3655_v1 }
0x214d   :  { %2869 = vmatpush1.bf16.msra.mxu0 %v3665_v6 }
0x214e   :  { %2871 = vmatprep.subr.bf16.mxu0 %v3683_v21 }
0x2151   :  { %2873 = vmatpush1.bf16.msra.mxu0 %v3691_v24 }
0x2217   :  { %v2064_v13 = vpop.f32.mrb[40].mxu0 }
0x2218   :  { %v2069_v52 = vadd.f32 %v2064_v13, %v3784_v55  ;;  %v2066_v30 = vpop.f32.mrb[41].mxu0 }
0x2219   :  { %v2070_v11 = vadd.f32 %v2066_v30, %v3781_v48 }
0x221a   :  { %3086 = vtanh.f32 %v2069_v52  ;;  %v2601_v12 = vmul.f32 -1.442695, %v2069_v52 }
0x221b   :  { %3088 = vtanh.f32 %v2070_v11  ;;  %v2602_v16 = vmul.f32 -1.442695, %v2070_v11 }
0x221c   :  { %3090 = vpow2.f32 %v2601_v12 }
0x221d   :  { %3092 = vpow2.f32 %v2602_v16 }
0x2224   :  { %v3087_v25 = vpop.eup %3086 }
0x2225   :  { %v3089_v26 = vpop.eup %3088  ;;  %2087 = vrot.lane.b32.xlu0 %v3087_v25, %s3151_s0 }
0x2226   :  { %2098 = vrot.lane.b32.xlu1 %v3089_v26, %s3151_s0  ;;  %v3091_v19 = vpop.eup %3090 }
0x2227   :  { %v3093_v8 = vpop.eup %3092  ;;  %v2077_v62 = vadd.f32 1.0, %v3091_v19 }
0x2228   :  { %v2078_v46 = vadd.f32 1.0, %v3093_v8 }
0x2229   :  { %3094 = vrcp.f32 %v2077_v62 }
0x222a   :  { %3096 = vrcp.f32 %v2078_v46 }
0x2233   :  { %v3095_v55 = vpop.eup %3094 }
0x2234   :  { %v3097_v37 = vpop.eup %3096  ;;  %v2085_v39 = vmul.f32 %v3095_v55, %v1962_v49 }
0x2235   :  { %v2096_v60 = vmul.f32 %v3097_v37, %v1973_v57 }
0x2297   :  { %v2088_v48 = vpop.permute.xlu0 %2087 }
0x2298   :  { %v2090_v27 = vmul.f32 %v3095_v55, %v2088_v48  ;;  %v2099_v23 = vpop.permute.xlu1 %2098 }
0x2299   :  { %v2101_v31 = vmul.f32 %v3097_v37, %v2099_v23 }
0x229a   :  { %2092 = vrot.lane.b32.xlu0 %v2090_v27, %s3152_s3 }
0x229b   :  { %2103 = vrot.lane.b32.xlu1 %v2101_v31, %s3152_s3 }
0x230c   :  { %v2093_v10 = vpop.permute.xlu0 %2092 }
0x230d   :  { %v2095_v34 = vadd.f32 %v2093_v10, %v2085_v39  ;;  %v2104_v53 = vpop.permute.xlu1 %2103 }
0x230e   :  { %v2106_v35 = vadd.f32 %v2104_v53, %v2096_v60 }
0x230f   :  { %3098 = vtanh.f32 %v2095_v34 }
0x2310   :  { %3100 = vtanh.f32 %v2106_v35 }
0x2319   :  { %v3099_v50 = vpop.eup %3098 }
0x231a   :  { %v3101_v22 = vpop.eup %3100  ;;  %2109 = vrot.lane.b32.xlu0 %v3099_v50, %s3151_s0 }
0x231b   :  { %2115 = vrot.lane.b32.xlu1 %v3101_v22, %s3151_s0 }
0x238c   :  { %v2110_v28 = vpop.permute.xlu0 %2109 }
0x238d   :  { %v2112_v41 = vmul.f32 %v3095_v55, %v2110_v28  ;;  %v2116_v2 = vpop.permute.xlu1 %2115 }
0x238e   :  { %v2118_v29 = vmul.f32 %v3097_v37, %v2116_v2 }
0x238f   :  { %2120 = vrot.lane.b32.xlu0 %v2112_v41, %s3152_s3 }
0x2390   :  { %2124 = vrot.lane.b32.xlu1 %v2118_v29, %s3151_s0 }
0x2401   :  { %v2121_v33 = vpop.permute.xlu0 %2120 }
0x2402   :  { %v2125_v7 = vpop.permute.xlu1 %2124 }
0x2403   :  { %v2127_v32 = vsel %vm345_vm1, %v2121_v33, %v2125_v7 }
0x2404   :  { %2603 = vmatmul.mubr.msk.f32.vlgmr.msra.gmra.mrb[16].mxu1 %vm212_vm2, %v2127_v32 }
0x2405   :  { %2877 = vmatpush1.bf16.msra.mxu1 %v3601_v20  ;;  %2461 = vmatprep.mubr.f32.mxu1 %v3150_v3 }
0x2406   :  { %2879 = vmatprep.subr.bf16.mxu1 %v3623_v36 }
0x2409   :  { %2881 = vmatpush1.bf16.msra.mxu1 %v3634_v45 }
0x240a   :  { %2883 = vmatprep.subr.bf16.mxu1 %v3655_v1 }
0x240d   :  { %2885 = vmatpush1.bf16.msra.mxu1 %v3665_v6 }
0x240e   :  { %2887 = vmatprep.subr.bf16.mxu1 %v3683_v21 }
0x2411   :  { %2889 = vmatpush1.bf16.msra.mxu1 %v3691_v24 }
0x24d7   :  { %v2197_v44 = vpop.f32.mrb[16].mxu1 }
0x24d8   :  { %v2202_v40 = vadd.f32 %v2197_v44, %v3788_v58  ;;  %v2199_v43 = vpop.f32.mrb[17].mxu1 }
0x24d9   :  { %v2203_v20 = vadd.f32 %v2199_v43, %v3777_v42 }
0x24da   :  { %3102 = vtanh.f32 %v2202_v40  ;;  %v2604_v45 = vmul.f32 -1.442695, %v2202_v40 }
0x24db   :  { %3104 = vtanh.f32 %v2203_v20  ;;  %v2605_v1 = vmul.f32 -1.442695, %v2203_v20 }
0x24dc   :  { %3106 = vpow2.f32 %v2604_v45 }
0x24dd   :  { %3108 = vpow2.f32 %v2605_v1 }
0x24e4   :  { %v3103_v3 = vpop.eup %3102 }
0x24e5   :  { %v3105_v36 = vpop.eup %3104  ;;  %2220 = vrot.lane.b32.xlu0 %v3103_v3, %s3151_s0 }
0x24e6   :  { %2231 = vrot.lane.b32.xlu1 %v3105_v36, %s3151_s0  ;;  %v3107_v6 = vpop.eup %3106 }
0x24e7   :  { %v3109_v21 = vpop.eup %3108  ;;  %v2210_v24 = vadd.f32 1.0, %v3107_v6 }
0x24e8   :  { %v2211_v49 = vadd.f32 1.0, %v3109_v21 }
0x24e9   :  { %3110 = vrcp.f32 %v2210_v24 }
0x24ea   :  { %3112 = vrcp.f32 %v2211_v49 }
0x24f3   :  { %v3111_v58 = vpop.eup %3110 }
0x24f4   :  { %v3113_v51 = vpop.eup %3112  ;;  %v2218_v4 = vmul.f32 %v3111_v58, %v2095_v34 }
0x24f5   :  { %v2229_v59 = vmul.f32 %v3113_v51, %v2106_v35 }
0x2557   :  { %v2221_v42 = vpop.permute.xlu0 %2220 }
0x2558   :  { %v2223_v57 = vmul.f32 %v3111_v58, %v2221_v42  ;;  %v2232_v63 = vpop.permute.xlu1 %2231 }
0x2559   :  { %v2234_v38 = vmul.f32 %v3113_v51, %v2232_v63 }
0x255a   :  { %2225 = vrot.lane.b32.xlu0 %v2223_v57, %s3152_s3 }
0x255b   :  { %2236 = vrot.lane.b32.xlu1 %v2234_v38, %s3152_s3 }
0x25cc   :  { %v2226_v47 = vpop.permute.xlu0 %2225 }
0x25cd   :  { %v2228_v9 = vadd.f32 %v2226_v47, %v2218_v4  ;;  %v2237_v14 = vpop.permute.xlu1 %2236 }
0x25ce   :  { %v2239_v18 = vadd.f32 %v2237_v14, %v2229_v59 }
0x25cf   :  { %3114 = vtanh.f32 %v2228_v9 }
0x25d0   :  { %3116 = vtanh.f32 %v2239_v18 }
0x25d9   :  { %v3115_v54 = vpop.eup %3114 }
0x25da   :  { %v3117_v13 = vpop.eup %3116  ;;  %2242 = vrot.lane.b32.xlu0 %v3115_v54, %s3151_s0 }
0x25db   :  { %2248 = vrot.lane.b32.xlu1 %v3117_v13, %s3151_s0 }
0x264c   :  { %v2243_v52 = vpop.permute.xlu0 %2242 }
0x264d   :  { %v2245_v30 = vmul.f32 %v3111_v58, %v2243_v52  ;;  %v2249_v11 = vpop.permute.xlu1 %2248 }
0x264e   :  { %v2251_v25 = vmul.f32 %v3113_v51, %v2249_v11 }
0x264f   :  { %2253 = vrot.lane.b32.xlu0 %v2245_v30, %s3152_s3 }
0x2650   :  { %2257 = vrot.lane.b32.xlu1 %v2251_v25, %s3151_s0 }
0x26c1   :  { %v2254_v26 = vpop.permute.xlu0 %2253 }
0x26c2   :  { %v2258_v12 = vpop.permute.xlu1 %2257 }
0x26c3   :  { %v2260_v16 = vsel %vm345_vm1, %v2254_v26, %v2258_v12  ;;  %v14_v26 = vstv %s3947_s8 }
0x26c4   :  { %2606 = vmatmul.mubr.msk.f32.vlgmr.msra.gmra.mrb[42].mxu0 %vm212_vm2, %v2260_v16  ;;  %15 = vst [vmem:[#allocation2] sm:$0x1] %v14_v26 }
0x2797   :  { %v2330_v19 = vpop.f32.mrb[42].mxu0 }
0x2798   :  { %v2335_v8 = vadd.f32 %v2330_v19, %v3792_v5  ;;  %v2332_v62 = vpop.f32.mrb[43].mxu0 }
0x2799   :  { %v2336_v46 = vadd.f32 %v2332_v62, %v3773_v56 }
0x279a   :  { %3118 = vtanh.f32 %v2335_v8  ;;  %v2607_v37 = vmul.f32 -1.442695, %v2335_v8  ;;  %v2522_v8 = vsel %vm345_vm1, %v3753_v61, %v3710_v17 }
0x279b   :  { %3120 = vtanh.f32 %v2336_v46  ;;  %v2608_v27 = vmul.f32 -1.442695, %v2336_v46 }
0x279c   :  { %3122 = vpow2.f32 %v2607_v37 }
0x279d   :  { %3124 = vpow2.f32 %v2608_v27 }
0x27a4   :  { %v3119_v55 = vpop.eup %3118 }
0x27a5   :  { %v3121_v48 = vpop.eup %3120  ;;  %2353 = vrot.lane.b32.xlu0 %v3119_v55, %s3151_s0  ;;  %v2612_v55 = vld [vmem:[%s3948_s7] ss:$0 sm:$0xff] }
0x27a6   :  { %2364 = vrot.lane.b32.xlu1 %v3121_v48, %s3151_s0  ;;  %v3123_v23 = vpop.eup %3122 }
0x27a7   :  { %v3125_v31 = vpop.eup %3124  ;;  %v2343_v39 = vadd.f32 1.0, %v3123_v23  ;;  %v2613_v23 = vld [vmem:[#allocation2] ss:$0 sm:$0xff] }
0x27a8   :  { %v2344_v10 = vadd.f32 1.0, %v3125_v31 }
0x27a9   :  { %3126 = vrcp.f32 %v2343_v39 }
0x27aa   :  { %3128 = vrcp.f32 %v2344_v10 }
0x27b3   :  { %v3127_v5 = vpop.eup %3126 }
0x27b4   :  { %v3129_v60 = vpop.eup %3128  ;;  %v2351_v50 = vmul.f32 %v3127_v5, %v2228_v9 }
0x27b5   :  { %v2362_v28 = vmul.f32 %v3129_v60, %v2239_v18 }
0x2817   :  { %v2354_v56 = vpop.permute.xlu0 %2353 }
0x2818   :  { %v2356_v34 = vmul.f32 %v3127_v5, %v2354_v56  ;;  %v2365_v53 = vpop.permute.xlu1 %2364 }
0x2819   :  { %v2367_v35 = vmul.f32 %v3129_v60, %v2365_v53 }
0x281a   :  { %2358 = vrot.lane.b32.xlu0 %v2356_v34, %s3152_s3 }
0x281b   :  { %2369 = vrot.lane.b32.xlu1 %v2367_v35, %s3152_s3 }
0x288c   :  { %v2359_v22 = vpop.permute.xlu0 %2358 }
0x288d   :  { %v2361_v41 = vadd.f32 %v2359_v22, %v2351_v50  ;;  %v2370_v2 = vpop.permute.xlu1 %2369 }
0x288e   :  { %v2372_v29 = vadd.f32 %v2370_v2, %v2362_v28 }
0x288f   :  { %3130 = vtanh.f32 %v2361_v41 }
0x2890   :  { %3132 = vtanh.f32 %v2372_v29 }
0x2899   :  { %v3131_v33 = vpop.eup %3130 }
0x289a   :  { %v3133_v7 = vpop.eup %3132  ;;  %2375 = vrot.lane.b32.xlu0 %v3131_v33, %s3151_s0 }
0x289b   :  { %2381 = vrot.lane.b32.xlu1 %v3133_v7, %s3151_s0 }
0x290c   :  { %v2376_v32 = vpop.permute.xlu0 %2375 }
0x290d   :  { %v2378_v44 = vmul.f32 %v3127_v5, %v2376_v32  ;;  %v2382_v40 = vpop.permute.xlu1 %2381 }
0x290e   :  { %v2384_v43 = vmul.f32 %v3129_v60, %v2382_v40 }
0x290f   :  { %2386 = vrot.lane.b32.xlu0 %v2378_v44, %s3152_s3 }
0x2910   :  { %2390 = vrot.lane.b32.xlu1 %v2384_v43, %s3151_s0 }
0x2981   :  { %v2387_v20 = vpop.permute.xlu0 %2386 }
0x2982   :  { %v2391_v3 = vpop.permute.xlu1 %2390 }
0x2983   :  { %v2393_v36 = vsel %vm345_vm1, %v2387_v20, %v2391_v3 }
0x2984   :  { %2609 = vmatmul.mubr.msk.f32.vlgmr.msra.gmra.mrb[18].mxu1 %vm212_vm2, %v2393_v36 }
0x2a57   :  { %v2463_v45 = vpop.f32.mrb[18].mxu1 }
0x2a58   :  { %v2468_v1 = vadd.f32 %v2463_v45, %v3794_v15  ;;  %v2465_v6 = vpop.f32.mrb[19].mxu1 }
0x2a59   :  { %v2469_v21 = vadd.f32 %v2465_v6, %v3769_v0 }
0x2a5a   :  { %3134 = vtanh.f32 %v2468_v1  ;;  %v2610_v58 = vmul.f32 -1.442695, %v2468_v1 }
0x2a5b   :  { %3136 = vtanh.f32 %v2469_v21  ;;  %v2611_v42 = vmul.f32 -1.442695, %v2469_v21 }
0x2a5c   :  { %3138 = vpow2.f32 %v2610_v58 }
0x2a5d   :  { %3140 = vpow2.f32 %v2611_v42 }
0x2a64   :  { %v3135_v24 = vpop.eup %3134 }
0x2a65   :  { %v3137_v49 = vpop.eup %3136  ;;  %2486 = vrot.lane.b32.xlu0 %v3135_v24, %s3151_s0 }
0x2a66   :  { %2497 = vrot.lane.b32.xlu1 %v3137_v49, %s3151_s0  ;;  %v3139_v51 = vpop.eup %3138 }
0x2a67   :  { %v3141_v57 = vpop.eup %3140  ;;  %v2476_v63 = vadd.f32 1.0, %v3139_v51 }
0x2a68   :  { %v2477_v38 = vadd.f32 1.0, %v3141_v57 }
0x2a69   :  { %3142 = vrcp.f32 %v2476_v63 }
0x2a6a   :  { %3144 = vrcp.f32 %v2477_v38 }
0x2a73   :  { %v3143_v15 = vpop.eup %3142 }
0x2a74   :  { %v3145_v4 = vpop.eup %3144  ;;  %v2484_v14 = vmul.f32 %v3143_v15, %v2361_v41 }
0x2a75   :  { %v2495_v54 = vmul.f32 %v3145_v4, %v2372_v29 }
0x2ad7   :  { %v2487_v0 = vpop.permute.xlu0 %2486 }
0x2ad8   :  { %v2489_v47 = vmul.f32 %v3143_v15, %v2487_v0  ;;  %v2498_v59 = vpop.permute.xlu1 %2497 }
0x2ad9   :  { %v2500_v9 = vmul.f32 %v3145_v4, %v2498_v59 }
0x2ada   :  { %2491 = vrot.lane.b32.xlu0 %v2489_v47, %s3152_s3 }
0x2adb   :  { %2502 = vrot.lane.b32.xlu1 %v2500_v9, %s3152_s3  ;;  %s3153_s3 = smov 96  }
0x2b4c   :  { %v2492_v18 = vpop.permute.xlu0 %2491 }
0x2b4d   :  { %v2494_v13 = vadd.f32 %v2492_v18, %v2484_v14  ;;  %v2503_v52 = vpop.permute.xlu1 %2502 }
0x2b4e   :  { %v2505_v30 = vadd.f32 %v2503_v52, %v2495_v54 }
0x2b4f   :  { %3146 = vtanh.f32 %v2494_v13 }
0x2b50   :  { %3148 = vtanh.f32 %v2505_v30 }
0x2b59   :  { %v3147_v11 = vpop.eup %3146 }
0x2b5a   :  { %v3149_v25 = vpop.eup %3148  ;;  %2508 = vrot.lane.b32.xlu0 %v3147_v11, %s3151_s0 }
0x2b5b   :  { %2514 = vrot.lane.b32.xlu1 %v3149_v25, %s3151_s0 }
0x2bcc   :  { %v2509_v12 = vpop.permute.xlu0 %2508 }
0x2bcd   :  { %v2511_v16 = vmul.f32 %v3143_v15, %v2509_v12  ;;  %v2515_v19 = vpop.permute.xlu1 %2514 }
0x2bce   :  { %v2517_v62 = vmul.f32 %v3145_v4, %v2515_v19 }
0x2bcf   :  { %2519 = vrot.lane.b32.xlu0 %v2511_v16, %s3153_s3 }
0x2c41   :  { %v2520_v46 = vpop.permute.xlu0 %2519 }
0x2c42   :  { %v2523_v48 = vsel %vm212_vm2, %v2522_v8, %v2520_v46 }
0x2c43   :  { %v2525_v37 = vsel %vm2524_vm3, %v2523_v48, %v2517_v62 }
0x2c44   :  { %v2533_v27 = vmul.f32 %v2612_v55, %v2525_v37 }
0x2c46   :  { %2534 = vadd.xlane.f32.xlu1 %v2533_v27 }
0x2cd3   :  { %v2535_v31 = vpop.xlane.xlu1 %2534 }
0x2cd4   :  { %v2543_v39 = vadd.f32 %v2613_v23, %v2535_v31 }
0x2cd6   :  { %2545 = vst.msk [vmem:[%s3949_s9] sm:$0x3] %vm2544_vm4, %v2543_v39 }

</bundles_post_ra>
